<compile_context>
chip_gen: v7x
topology: tpu7x:2x2x1
jax: 0.10.0
libtpu: 0.0.40
codegen_flags: <defaults>
</compile_context>

<pallas_src>
import jax
import jax.numpy as jnp
from jax import lax
from jax.experimental import pallas as pl
from jax.experimental.pallas import tpu as pltpu


# --------------------------------------------------------------------------- #
# Kernel
# --------------------------------------------------------------------------- #
def _self_attn_kernel(x_ref, wq_ref, bq_ref, wk_ref, bk_ref, wv_ref, bv_ref,
                      gamma_ref, out_ref, k_scr, v_scr):
    qi = pl.program_id(1)
    tq = out_ref.shape[-1]

    # ---- K / V projections: once per batch element, persisted in scratch ----
    @pl.when(qi == 0)
    def _():
        x_full = x_ref[0].astype(jnp.bfloat16)                         # (C, N)
        k = jnp.dot(wk_ref[...], x_full,
                    preferred_element_type=jnp.float32) + bk_ref[...]
        k_scr[...] = k.astype(k_scr.dtype)                             # (Cqp, N) bf16
        v = jnp.dot(wv_ref[...], x_full,
                    preferred_element_type=jnp.float32) + bv_ref[...]
        v_scr[...] = v.astype(v_scr.dtype)                             # (C, N) bf16

    # ---- Q projection for this tile of TQ query pixels -----------------------
    # Slice the query tile out of the resident full-x block (no separate DMA).
    start = qi * tq
    if tq % 128 == 0:
        start = pl.multiple_of(start, 128)
    x_tile_f32 = x_ref[0, :, pl.ds(start, tq)]                         # (C, TQ) f32
    x_tile = x_tile_f32.astype(jnp.bfloat16)

    q = (jnp.dot(wq_ref[...], x_tile,
                 preferred_element_type=jnp.float32)
         + bq_ref[...]).astype(jnp.bfloat16)                           # (Cqp, TQ)

    # scores[i, j] = sum_c q[c, i] * k[c, j]  -> (TQ, N)
    # Contract dim 0 of both operands (trans_a form): no explicit q.T relayout.
    scores = lax.dot_general(
        q, k_scr[...],
        dimension_numbers=(((0,), (0,)), ((), ())),
        preferred_element_type=jnp.float32)                            # (TQ, N) f32

    # Row softmax — every row sees its full key axis, no online pass needed.
    # (exp kept in f32: v5e has no bf16 EUP; accuracy contract.)
    m = jnp.max(scores, axis=-1, keepdims=True)
    p = jnp.exp(scores - m)
    denom = jnp.sum(p, axis=-1, keepdims=True)
    attn = (p * pl.reciprocal(denom, approx=True)).astype(jnp.bfloat16)

    # out[c, i] = sum_j v[c, j] * attn[i, j] — bf16 operands, f32 accumulate.
    o = lax.dot_general(
        v_scr[...], attn,
        dimension_numbers=(((1,), (1,)), ((), ())),
        preferred_element_type=jnp.float32)                            # (C, TQ) f32

    gamma = gamma_ref[0]
    out_ref[0] = (gamma * o + x_tile_f32).astype(out_ref.dtype)


# --------------------------------------------------------------------------- #
# Wrapper
# --------------------------------------------------------------------------- #
def _vmem_capacity_bytes():
    try:
        return int(pltpu.get_tpu_info().vmem_capacity_bytes)
    except Exception:
        return 64 * 1024 * 1024            # conservative (v7x per-TC) default


def _pick_tq(N, C, Cqp, vmem_cap):
    """Largest lane-aligned query tile whose working set fits the VMEM budget."""
    budget = 0.70 * vmem_cap
    fixed = (C * N * 4                       # full-x block (f32)
             + Cqp * N * 2 + C * N * 2       # k / v scratch (bf16)
             + (2 * Cqp * C + C * C) * 2)    # bf16 weights
    divisors = [c for c in (1024, 512, 256, 128) if N % c == 0]
    if not divisors:
        return N
    for cand in divisors:                    # largest first
        per_tile = (2 * C * cand * 4                 # out tile (double buffered)
                    + cand * N * (4 + 4 + 2)         # scores / p (f32) + attn (bf16)
                    + (Cqp + C) * cand * 4)          # q / o temporaries
        if fixed + per_tile <= budget:
            return cand
    return divisors[-1]


def _build_call(B, C, N, tq, Cqp, out_dtype, *, vmem_limit,
                single_buffer_x, single_buffer_weights):
    nt = N // tq

    def const_spec(shape):
        # Grid-invariant blocks: single-buffer to reclaim VMEM (no re-DMA ever).
        if single_buffer_weights:
            return pl.BlockSpec(shape, lambda b, i: (0, 0),
                                pipeline_mode=pl.Buffered(1))
        return pl.BlockSpec(shape, lambda b, i: (0, 0))

    if single_buffer_x:
        # Changes only with the batch index; single-buffer under tight VMEM
        # (v7x) at the cost of one exposed DMA per batch element.
        x_spec = pl.BlockSpec((1, C, N), lambda b, i: (b, 0, 0),
                              pipeline_mode=pl.Buffered(1))
    else:
        x_spec = pl.BlockSpec((1, C, N), lambda b, i: (b, 0, 0))

    return pl.pallas_call(
        _self_attn_kernel,
        out_shape=jax.ShapeDtypeStruct((B, C, N), out_dtype),
        grid_spec=pltpu.PrefetchScalarGridSpec(
            num_scalar_prefetch=0,
            grid=(B, nt),
            in_specs=[
                x_spec,                                          # x full (f32)
                const_spec((Cqp, C)),                            # Wq (bf16)
                const_spec((Cqp, 1)),                            # bq (f32)
                const_spec((Cqp, C)),                            # Wk (bf16)
                const_spec((Cqp, 1)),                            # bk (f32)
                const_spec((C, C)),                              # Wv (bf16)
                const_spec((C, 1)),                              # bv (f32)
                pl.BlockSpec(memory_space=pltpu.MemorySpace.SMEM),  # gamma scalar
            ],
            out_specs=pl.BlockSpec((1, C, tq), lambda b, i: (b, 0, i)),
            scratch_shapes=[
                pltpu.VMEM((Cqp, N), jnp.bfloat16),   # k for all N pixels
                pltpu.VMEM((C, N), jnp.bfloat16),     # v for all N pixels
            ],
        ),
        compiler_params=pltpu.CompilerParams(
            # Query-tile axis carries the K/V scratch across steps -> arbitrary.
            # Batch axis is parallel (megacore / v7x two-TC sharding).
            dimension_semantics=("parallel", "arbitrary"),
            vmem_limit_bytes=vmem_limit,
        ),
    )


def self_attention_pallas(x_nchw, wq, bq, wk, bk, wv, bv, gamma, *, tq=None):
    """x_nchw: (B, C, H, W); wq/wk: (C//8, C, 1, 1); wv: (C, C, 1, 1)."""
    B, C, H, W = x_nchw.shape
    N = H * W
    Cq = wq.shape[0]
    # Pad q/k channels only to the bf16 sublane granule (16), not to 128.
    Cqp = max(16, ((Cq + 15) // 16) * 16)

    vmem_cap = _vmem_capacity_bytes()
    if tq is None:
        tq = _pick_tq(N, C, Cqp, vmem_cap)
    assert N % tq == 0, "tq must divide N"

    # NCHW -> (B, C, N): a pure reshape, identical memory layout (no HBM pass).
    x_cn = x_nchw.reshape(B, C, N)

    # 1x1-conv weights as bf16 matmul weights (MXU-native on v5e/v6e/v7x);
    # q/k rows zero-padded to Cqp — padded rows contribute exactly zero to the
    # scores, so results are unchanged.  Biases stay f32 (added post-matmul).
    wq_p = jnp.pad(wq.reshape(Cq, C).astype(jnp.float32),
                   ((0, Cqp - Cq), (0, 0))).astype(jnp.bfloat16)
    wk_p = jnp.pad(wk.reshape(Cq, C).astype(jnp.float32),
                   ((0, Cqp - Cq), (0, 0))).astype(jnp.bfloat16)
    bq_p = jnp.pad(bq.astype(jnp.float32), (0, Cqp - Cq)).reshape(Cqp, 1)
    bk_p = jnp.pad(bk.astype(jnp.float32), (0, Cqp - Cq)).reshape(Cqp, 1)
    wv_r = wv.reshape(C, C).astype(jnp.bfloat16)
    bv_r = bv.astype(jnp.float32).reshape(C, 1)
    gamma_r = jnp.asarray(gamma, jnp.float32).reshape(1)

    # VMEM budget derived from actual needs with headroom, clamped to 75% of
    # this chip's capacity (v5e/v6e: 128 MiB; v7x: 64 MiB per TC).
    tight = vmem_cap <= 96 * 1024 * 1024           # v7x-class VMEM
    x_bufs = 1 if tight else 2
    weight_bytes = (2 * Cqp * C + C * C) * 2 + (2 * Cqp + C) * 4
    needed = (x_bufs * C * N * 4
              + weight_bytes
              + 2 * C * tq * 4
              + Cqp * N * 2 + C * N * 2
              + tq * N * 10 + (Cqp + C) * tq * 4)
    vmem_limit = int(min(max(needed * 1.5, 32 * 1024 * 1024), 0.75 * vmem_cap))

    args = (x_cn, wq_p, bq_p, wk_p, bk_p, wv_r, bv_r, gamma_r)
    try:
        out_cn = _build_call(B, C, N, tq, Cqp, x_cn.dtype,
                             vmem_limit=vmem_limit,
                             single_buffer_x=tight,
                             single_buffer_weights=True)(*args)
    except Exception:
        # Fallback for JAX versions without BlockSpec(pipeline_mode=...):
        # identical kernel, default double-buffered specs.
        out_cn = _build_call(B, C, N, tq, Cqp, x_cn.dtype,
                             vmem_limit=vmem_limit,
                             single_buffer_x=False,
                             single_buffer_weights=False)(*args)

    # (B, C, N) -> NCHW is again a free reshape.
    return out_cn.reshape(B, C, H, W)


# --------------------------------------------------------------------------- #
# Pure-JAX reference (mirrors the PyTorch forward) and test
# --------------------------------------------------------------------------- #
def self_attention_ref(x_nchw, wq, bq, wk, bk, wv, bv, gamma):
    B, C, H, W = x_nchw.shape
    N = H * W
    Cq = wq.shape[0]
    xf = x_nchw.reshape(B, C, N)
    q = jnp.einsum('oc,bcn->bon', wq.reshape(Cq, C), xf) + bq[None, :, None]
    k = jnp.einsum('oc,bcn->bon', wk.reshape(Cq, C), xf) + bk[None, :, None]
    v = jnp.einsum('oc,bcn->bon', wv.reshape(C, C), xf) + bv[None, :, None]
    attn = jax.nn.softmax(jnp.einsum('bci,bcj->bij', q, k), axis=-1)   # (B, N, N)
    out = jnp.einsum('bcj,bij->bci', v, attn)                          # (B, C, N)
    return gamma.reshape(()) * out.reshape(B, C, H, W) + x_nchw


if __name__ == "__main__":
    key = jax.random.PRNGKey(0)
    B, C, H, W = 2, 32, 16, 16        # N = 256 -> two query tiles of 128
    Cq = C // 8

    ks = jax.random.split(key, 8)
    x = jax.random.normal(ks[0], (B, C, H, W), dtype=jnp.float32)
    wq = jax.random.normal(ks[1], (Cq, C, 1, 1), dtype=jnp.float32) * 0.1
    bq = jax.random.normal(ks[2], (Cq,), dtype=jnp.float32) * 0.1
    wk = jax.random.normal(ks[3], (Cq, C, 1, 1), dtype=jnp.float32) * 0.1
    bk = jax.random.normal(ks[4], (Cq,), dtype=jnp.float32) * 0.1
    wv = jax.random.normal(ks[5], (C, C, 1, 1), dtype=jnp.float32) * 0.1
    bv = jax.random.normal(ks[6], (C,), dtype=jnp.float32) * 0.1
    # PyTorch inits gamma to 0 (out == x trivially); use a nonzero value so the
    # attention path is actually exercised.
    gamma = jnp.array([0.5], dtype=jnp.float32)

    # tq=128 forces the multi-tile path (2 query tiles per batch element).
    out = jax.block_until_ready(
        self_attention_pallas(x, wq, bq, wk, bk, wv, bv, gamma, tq=128))

    ref = self_attention_ref(x, wq, bq, wk, bk, wv, bv, gamma)
    assert out.shape == (B, C, H, W)
    max_err = float(jnp.max(jnp.abs(out - ref)))
    # Accepted accuracy contract: bf16 operands on all heavy matmuls (q/k/v
    # projections, scores, attn@v) with f32 accumulation + approx reciprocal.
    assert jnp.allclose(out, ref, atol=2e-2, rtol=2e-2), \
        f"mismatch vs reference (max abs err {max_err})"

    print("KERNEL_OK")
</pallas_src>

<mosaic_0001>
module attributes {stable_mosaic.version = 11 : i64} {
  func.func @_self_attn_kernel(%arg0: i32, %arg1: i32, %arg2: memref<1x32x256xf32, #tpu.memory_space<vmem>>, %arg3: memref<16x32xbf16, #tpu.memory_space<vmem>>, %arg4: memref<16x1xf32, #tpu.memory_space<vmem>>, %arg5: memref<16x32xbf16, #tpu.memory_space<vmem>>, %arg6: memref<16x1xf32, #tpu.memory_space<vmem>>, %arg7: memref<32x32xbf16, #tpu.memory_space<vmem>>, %arg8: memref<32x1xf32, #tpu.memory_space<vmem>>, %arg9: memref<1xf32, #tpu.memory_space<smem>>, %arg10: memref<1x32x128xf32, #tpu.memory_space<vmem>>, %arg11: memref<16x256xbf16, #tpu.memory_space<vmem>>, %arg12: memref<32x256xbf16, #tpu.memory_space<vmem>>) attributes {dimension_semantics = [#tpu.dimension_semantics<parallel>, #tpu.dimension_semantics<arbitrary>], iteration_bounds = array<i64: 2, 2>, scalar_prefetch = 0 : i64, scratch_operands = 2 : i64, tpu.core_type = #tpu.core_type<tc>, window_params = [{pipeline_mode = #tpu.pipeline_mode<synchronous>, transform_indices = @transform_0, window_bounds = array<i64: 1, 32, 256>}, {pipeline_mode = #tpu.pipeline_mode<synchronous>, transform_indices = @transform_1, window_bounds = array<i64: 16, 32>}, {pipeline_mode = #tpu.pipeline_mode<synchronous>, transform_indices = @transform_2, window_bounds = array<i64: 16, 1>}, {pipeline_mode = #tpu.pipeline_mode<synchronous>, transform_indices = @transform_3, window_bounds = array<i64: 16, 32>}, {pipeline_mode = #tpu.pipeline_mode<synchronous>, transform_indices = @transform_4, window_bounds = array<i64: 16, 1>}, {pipeline_mode = #tpu.pipeline_mode<synchronous>, transform_indices = @transform_5, window_bounds = array<i64: 32, 32>}, {pipeline_mode = #tpu.pipeline_mode<synchronous>, transform_indices = @transform_6, window_bounds = array<i64: 32, 1>}, {transform_indices = @transform_7, window_bounds = array<i64: 1>}, {transform_indices = @transform_8, window_bounds = array<i64: 1, 32, 128>}]} {
    %c0_i32 = arith.constant 0 : i32
    %0 = arith.cmpi eq, %arg1, %c0_i32 : i32
    %1 = arith.extui %0 : i1 to i32
    %c0_i32_0 = arith.constant 0 : i32
    %2 = arith.cmpi ne, %1, %c0_i32_0 : i32
    scf.if %2 {
      %c0_18 = arith.constant 0 : index
      %c0_19 = arith.constant 0 : index
      %c0_20 = arith.constant 0 : index
      %37 = vector.load %arg2[%c0_18, %c0_19, %c0_20] : memref<1x32x256xf32, #tpu.memory_space<vmem>>, vector<1x32x256xf32>
      %38 = vector.shape_cast %37 : vector<1x32x256xf32> to vector<32x256xf32>
      %39 = arith.truncf %38 : vector<32x256xf32> to vector<32x256xbf16>
      %c0_21 = arith.constant 0 : index
      %c0_22 = arith.constant 0 : index
      %40 = vector.load %arg5[%c0_21, %c0_22] : memref<16x32xbf16, #tpu.memory_space<vmem>>, vector<16x32xbf16>
      %cst_23 = arith.constant dense<0.000000e+00> : vector<16x256xf32>
      %41 = tpu.matmul %40, %39, %cst_23 {dimension_numbers = #tpu.dot_dimension_numbers<[1], [0], [0], [1], [0, 0, 1, 1], [], []>} : vector<16x32xbf16>, vector<32x256xbf16>, vector<16x256xf32> -> vector<16x256xf32>
      %c0_24 = arith.constant 0 : index
      %c0_25 = arith.constant 0 : index
      %42 = vector.load %arg6[%c0_24, %c0_25] : memref<16x1xf32, #tpu.memory_space<vmem>>, vector<16x1xf32>
      %43 = vector.broadcast %42 : vector<16x1xf32> to vector<16x256xf32>
      %44 = arith.addf %41, %43 : vector<16x256xf32>
      %45 = arith.truncf %44 : vector<16x256xf32> to vector<16x256xbf16>
      %c0_26 = arith.constant 0 : index
      %c0_27 = arith.constant 0 : index
      %46 = vector.load %arg11[%c0_26, %c0_27] : memref<16x256xbf16, #tpu.memory_space<vmem>>, vector<16x256xbf16>
      tpu.vector_store %arg11[%c0_26, %c0_27], %45 {strides = array<i32>} : memref<16x256xbf16, #tpu.memory_space<vmem>>, vector<16x256xbf16>,
      %c0_28 = arith.constant 0 : index
      %c0_29 = arith.constant 0 : index
      %47 = vector.load %arg7[%c0_28, %c0_29] : memref<32x32xbf16, #tpu.memory_space<vmem>>, vector<32x32xbf16>
      %cst_30 = arith.constant dense<0.000000e+00> : vector<32x256xf32>
      %48 = tpu.matmul %47, %39, %cst_30 {dimension_numbers = #tpu.dot_dimension_numbers<[1], [0], [0], [1], [0, 0, 1, 1], [], []>} : vector<32x32xbf16>, vector<32x256xbf16>, vector<32x256xf32> -> vector<32x256xf32>
      %c0_31 = arith.constant 0 : index
      %c0_32 = arith.constant 0 : index
      %49 = vector.load %arg8[%c0_31, %c0_32] : memref<32x1xf32, #tpu.memory_space<vmem>>, vector<32x1xf32>
      %50 = vector.broadcast %49 : vector<32x1xf32> to vector<32x256xf32>
      %51 = arith.addf %48, %50 : vector<32x256xf32>
      %52 = arith.truncf %51 : vector<32x256xf32> to vector<32x256xbf16>
      %c0_33 = arith.constant 0 : index
      %c0_34 = arith.constant 0 : index
      %53 = vector.load %arg12[%c0_33, %c0_34] : memref<32x256xbf16, #tpu.memory_space<vmem>>, vector<32x256xbf16>
      tpu.vector_store %arg12[%c0_33, %c0_34], %52 {strides = array<i32>} : memref<32x256xbf16, #tpu.memory_space<vmem>>, vector<32x256xbf16>,
    } else {
    }
    %c128_i32 = arith.constant 128 : i32
    %3 = arith.muli %arg1, %c128_i32 : i32
    %4 = tpu.assume_multiple %3, 128 : i32
    %c0 = arith.constant 0 : index
    %c0_1 = arith.constant 0 : index
    %5 = arith.index_cast %4 : i32 to index
    %6 = vector.load %arg2[%c0, %c0_1, %5] : memref<1x32x256xf32, #tpu.memory_space<vmem>>, vector<1x32x128xf32>
    %7 = vector.shape_cast %6 : vector<1x32x128xf32> to vector<32x128xf32>
    %8 = arith.truncf %7 : vector<32x128xf32> to vector<32x128xbf16>
    %c0_2 = arith.constant 0 : index
    %c0_3 = arith.constant 0 : index
    %9 = vector.load %arg3[%c0_2, %c0_3] : memref<16x32xbf16, #tpu.memory_space<vmem>>, vector<16x32xbf16>
    %cst = arith.constant dense<0.000000e+00> : vector<16x128xf32>
    %10 = tpu.matmul %9, %8, %cst {dimension_numbers = #tpu.dot_dimension_numbers<[1], [0], [0], [1], [0, 0, 1, 1], [], []>} : vector<16x32xbf16>, vector<32x128xbf16>, vector<16x128xf32> -> vector<16x128xf32>
    %c0_4 = arith.constant 0 : index
    %c0_5 = arith.constant 0 : index
    %11 = vector.load %arg4[%c0_4, %c0_5] : memref<16x1xf32, #tpu.memory_space<vmem>>, vector<16x1xf32>
    %12 = vector.broadcast %11 : vector<16x1xf32> to vector<16x128xf32>
    %13 = arith.addf %10, %12 : vector<16x128xf32>
    %14 = arith.truncf %13 : vector<16x128xf32> to vector<16x128xbf16>
    %c0_6 = arith.constant 0 : index
    %c0_7 = arith.constant 0 : index
    %15 = vector.load %arg11[%c0_6, %c0_7] : memref<16x256xbf16, #tpu.memory_space<vmem>>, vector<16x256xbf16>
    %cst_8 = arith.constant dense<0.000000e+00> : vector<128x256xf32>
    %16 = tpu.matmul %14, %15, %cst_8 {dimension_numbers = #tpu.dot_dimension_numbers<[0], [0], [1], [1], [0, 1, 1, 1], [], []>} : vector<16x128xbf16>, vector<16x256xbf16>, vector<128x256xf32> -> vector<128x256xf32>
    %cst_9 = arith.constant dense<0xFF800000> : vector<128xf32>
    %17 = vector.multi_reduction <maximumf>, %16, %cst_9 [1] : vector<128x256xf32> to vector<128xf32>
    %18 = vector.shape_cast %17 : vector<128xf32> to vector<128x1xf32>
    %19 = vector.broadcast %18 : vector<128x1xf32> to vector<128x256xf32>
    %20 = arith.subf %16, %19 : vector<128x256xf32>
    %21 = math.exp %20 : vector<128x256xf32>
    %cst_10 = arith.constant dense<0.000000e+00> : vector<128xf32>
    %22 = vector.multi_reduction <add>, %21, %cst_10 [1] : vector<128x256xf32> to vector<128xf32>
    %23 = vector.shape_cast %22 : vector<128xf32> to vector<128x1xf32>
    %24 = tpu.reciprocal %23 {approx = true} : vector<128x1xf32> -> vector<128x1xf32>
    %25 = vector.broadcast %24 : vector<128x1xf32> to vector<128x256xf32>
    %26 = arith.mulf %21, %25 : vector<128x256xf32>
    %27 = arith.truncf %26 : vector<128x256xf32> to vector<128x256xbf16>
    %c0_11 = arith.constant 0 : index
    %c0_12 = arith.constant 0 : index
    %28 = vector.load %arg12[%c0_11, %c0_12] : memref<32x256xbf16, #tpu.memory_space<vmem>>, vector<32x256xbf16>
    %cst_13 = arith.constant dense<0.000000e+00> : vector<32x128xf32>
    %29 = tpu.matmul %28, %27, %cst_13 {dimension_numbers = #tpu.dot_dimension_numbers<[1], [1], [0], [0], [0, 0, 1, 0], [], []>} : vector<32x256xbf16>, vector<128x256xbf16>, vector<32x128xf32> -> vector<32x128xf32>
    %c0_14 = arith.constant 0 : index
    %30 = memref.load %arg9[%c0_14] : memref<1xf32, #tpu.memory_space<smem>>
    %31 = vector.broadcast %30 : f32 to vector<32x128xf32>
    %32 = arith.mulf %31, %29 : vector<32x128xf32>
    %33 = arith.addf %32, %7 : vector<32x128xf32>
    %c0_15 = arith.constant 0 : index
    %c0_16 = arith.constant 0 : index
    %c0_17 = arith.constant 0 : index
    %34 = vector.load %arg10[%c0_15, %c0_16, %c0_17] : memref<1x32x128xf32, #tpu.memory_space<vmem>>, vector<1x32x128xf32>
    %35 = vector.shape_cast %34 : vector<1x32x128xf32> to vector<32x128xf32>
    %36 = vector.shape_cast %33 : vector<32x128xf32> to vector<1x32x128xf32>
    tpu.vector_store %arg10[%c0_15, %c0_16, %c0_17], %36 {strides = array<i32>} : memref<1x32x128xf32, #tpu.memory_space<vmem>>, vector<1x32x128xf32>,
    return
  }
  func.func @transform_0(%arg0: i32, %arg1: i32) -> (i32, i32, i32) {
    %c0_i32 = arith.constant 0 : i32
    %c0_i32_0 = arith.constant 0 : i32
    %c0_i32_1 = arith.constant 0 : i32
    return %arg0, %c0_i32, %c0_i32_0 : i32, i32, i32
  }
  func.func @transform_1(%arg0: i32, %arg1: i32) -> (i32, i32) {
    %c0_i32 = arith.constant 0 : i32
    %c0_i32_0 = arith.constant 0 : i32
    %c0_i32_1 = arith.constant 0 : i32
    return %c0_i32, %c0_i32_0 : i32, i32
  }
  func.func @transform_2(%arg0: i32, %arg1: i32) -> (i32, i32) {
    %c0_i32 = arith.constant 0 : i32
    %c0_i32_0 = arith.constant 0 : i32
    %c0_i32_1 = arith.constant 0 : i32
    return %c0_i32, %c0_i32_0 : i32, i32
  }
  func.func @transform_3(%arg0: i32, %arg1: i32) -> (i32, i32) {
    %c0_i32 = arith.constant 0 : i32
    %c0_i32_0 = arith.constant 0 : i32
    %c0_i32_1 = arith.constant 0 : i32
    return %c0_i32, %c0_i32_0 : i32, i32
  }
  func.func @transform_4(%arg0: i32, %arg1: i32) -> (i32, i32) {
    %c0_i32 = arith.constant 0 : i32
    %c0_i32_0 = arith.constant 0 : i32
    %c0_i32_1 = arith.constant 0 : i32
    return %c0_i32, %c0_i32_0 : i32, i32
  }
  func.func @transform_5(%arg0: i32, %arg1: i32) -> (i32, i32) {
    %c0_i32 = arith.constant 0 : i32
    %c0_i32_0 = arith.constant 0 : i32
    %c0_i32_1 = arith.constant 0 : i32
    return %c0_i32, %c0_i32_0 : i32, i32
  }
  func.func @transform_6(%arg0: i32, %arg1: i32) -> (i32, i32) {
    %c0_i32 = arith.constant 0 : i32
    %c0_i32_0 = arith.constant 0 : i32
    %c0_i32_1 = arith.constant 0 : i32
    return %c0_i32, %c0_i32_0 : i32, i32
  }
  func.func @transform_7(%arg0: i32, %arg1: i32) -> i32 {
    %c0_i32 = arith.constant 0 : i32
    %c0_i32_0 = arith.constant 0 : i32
    return %c0_i32 : i32
  }
  func.func @transform_8(%arg0: i32, %arg1: i32) -> (i32, i32, i32) {
    %c0_i32 = arith.constant 0 : i32
    %c0_i32_0 = arith.constant 0 : i32
    return %arg0, %c0_i32, %arg1 : i32, i32, i32
  }
}

module attributes {stable_mosaic.version = 11 : i64} {
  func.func @_self_attn_kernel(%arg0: i32, %arg1: i32, %arg2: memref<1x32x256xf32, #tpu.memory_space<vmem>>, %arg3: memref<16x32xbf16, #tpu.memory_space<vmem>>, %arg4: memref<16x1xf32, #tpu.memory_space<vmem>>, %arg5: memref<16x32xbf16, #tpu.memory_space<vmem>>, %arg6: memref<16x1xf32, #tpu.memory_space<vmem>>, %arg7: memref<32x32xbf16, #tpu.memory_space<vmem>>, %arg8: memref<32x1xf32, #tpu.memory_space<vmem>>, %arg9: memref<1xf32, #tpu.memory_space<smem>>, %arg10: memref<1x32x128xf32, #tpu.memory_space<vmem>>, %arg11: memref<16x256xbf16, #tpu.memory_space<vmem>>, %arg12: memref<32x256xbf16, #tpu.memory_space<vmem>>) attributes {dimension_semantics = [#tpu.dimension_semantics<parallel>, #tpu.dimension_semantics<arbitrary>], iteration_bounds = array<i64: 2, 2>, scalar_prefetch = 0 : i64, scratch_operands = 2 : i64, tpu.core_type = #tpu.core_type<tc>, window_params = [{transform_indices = @transform_0, window_bounds = array<i64: 1, 32, 256>}, {pipeline_mode = #tpu.pipeline_mode<synchronous>, transform_indices = @transform_1, window_bounds = array<i64: 16, 32>}, {pipeline_mode = #tpu.pipeline_mode<synchronous>, transform_indices = @transform_2, window_bounds = array<i64: 16, 1>}, {pipeline_mode = #tpu.pipeline_mode<synchronous>, transform_indices = @transform_3, window_bounds = array<i64: 16, 32>}, {pipeline_mode = #tpu.pipeline_mode<synchronous>, transform_indices = @transform_4, window_bounds = array<i64: 16, 1>}, {pipeline_mode = #tpu.pipeline_mode<synchronous>, transform_indices = @transform_5, window_bounds = array<i64: 32, 32>}, {pipeline_mode = #tpu.pipeline_mode<synchronous>, transform_indices = @transform_6, window_bounds = array<i64: 32, 1>}, {transform_indices = @transform_7, window_bounds = array<i64: 1>}, {transform_indices = @transform_8, window_bounds = array<i64: 1, 32, 128>}]} {
    %c0_i32 = arith.constant 0 : i32
    %0 = arith.cmpi eq, %arg1, %c0_i32 : i32
    %1 = arith.extui %0 : i1 to i32
    %c0_i32_0 = arith.constant 0 : i32
    %2 = arith.cmpi ne, %1, %c0_i32_0 : i32
    scf.if %2 {
      %c0_18 = arith.constant 0 : index
      %c0_19 = arith.constant 0 : index
      %c0_20 = arith.constant 0 : index
      %37 = vector.load %arg2[%c0_18, %c0_19, %c0_20] : memref<1x32x256xf32, #tpu.memory_space<vmem>>, vector<1x32x256xf32>
      %38 = vector.shape_cast %37 : vector<1x32x256xf32> to vector<32x256xf32>
      %39 = arith.truncf %38 : vector<32x256xf32> to vector<32x256xbf16>
      %c0_21 = arith.constant 0 : index
      %c0_22 = arith.constant 0 : index
      %40 = vector.load %arg5[%c0_21, %c0_22] : memref<16x32xbf16, #tpu.memory_space<vmem>>, vector<16x32xbf16>
      %cst_23 = arith.constant dense<0.000000e+00> : vector<16x256xf32>
      %41 = tpu.matmul %40, %39, %cst_23 {dimension_numbers = #tpu.dot_dimension_numbers<[1], [0], [0], [1], [0, 0, 1, 1], [], []>} : vector<16x32xbf16>, vector<32x256xbf16>, vector<16x256xf32> -> vector<16x256xf32>
      %c0_24 = arith.constant 0 : index
      %c0_25 = arith.constant 0 : index
      %42 = vector.load %arg6[%c0_24, %c0_25] : memref<16x1xf32, #tpu.memory_space<vmem>>, vector<16x1xf32>
      %43 = vector.broadcast %42 : vector<16x1xf32> to vector<16x256xf32>
      %44 = arith.addf %41, %43 : vector<16x256xf32>
      %45 = arith.truncf %44 : vector<16x256xf32> to vector<16x256xbf16>
      %c0_26 = arith.constant 0 : index
      %c0_27 = arith.constant 0 : index
      %46 = vector.load %arg11[%c0_26, %c0_27] : memref<16x256xbf16, #tpu.memory_space<vmem>>, vector<16x256xbf16>
      tpu.vector_store %arg11[%c0_26, %c0_27], %45 {strides = array<i32>} : memref<16x256xbf16, #tpu.memory_space<vmem>>, vector<16x256xbf16>,
      %c0_28 = arith.constant 0 : index
      %c0_29 = arith.constant 0 : index
      %47 = vector.load %arg7[%c0_28, %c0_29] : memref<32x32xbf16, #tpu.memory_space<vmem>>, vector<32x32xbf16>
      %cst_30 = arith.constant dense<0.000000e+00> : vector<32x256xf32>
      %48 = tpu.matmul %47, %39, %cst_30 {dimension_numbers = #tpu.dot_dimension_numbers<[1], [0], [0], [1], [0, 0, 1, 1], [], []>} : vector<32x32xbf16>, vector<32x256xbf16>, vector<32x256xf32> -> vector<32x256xf32>
      %c0_31 = arith.constant 0 : index
      %c0_32 = arith.constant 0 : index
      %49 = vector.load %arg8[%c0_31, %c0_32] : memref<32x1xf32, #tpu.memory_space<vmem>>, vector<32x1xf32>
      %50 = vector.broadcast %49 : vector<32x1xf32> to vector<32x256xf32>
      %51 = arith.addf %48, %50 : vector<32x256xf32>
      %52 = arith.truncf %51 : vector<32x256xf32> to vector<32x256xbf16>
      %c0_33 = arith.constant 0 : index
      %c0_34 = arith.constant 0 : index
      %53 = vector.load %arg12[%c0_33, %c0_34] : memref<32x256xbf16, #tpu.memory_space<vmem>>, vector<32x256xbf16>
      tpu.vector_store %arg12[%c0_33, %c0_34], %52 {strides = array<i32>} : memref<32x256xbf16, #tpu.memory_space<vmem>>, vector<32x256xbf16>,
    } else {
    }
    %c128_i32 = arith.constant 128 : i32
    %3 = arith.muli %arg1, %c128_i32 : i32
    %4 = tpu.assume_multiple %3, 128 : i32
    %c0 = arith.constant 0 : index
    %c0_1 = arith.constant 0 : index
    %5 = arith.index_cast %4 : i32 to index
    %6 = vector.load %arg2[%c0, %c0_1, %5] : memref<1x32x256xf32, #tpu.memory_space<vmem>>, vector<1x32x128xf32>
    %7 = vector.shape_cast %6 : vector<1x32x128xf32> to vector<32x128xf32>
    %8 = arith.truncf %7 : vector<32x128xf32> to vector<32x128xbf16>
    %c0_2 = arith.constant 0 : index
    %c0_3 = arith.constant 0 : index
    %9 = vector.load %arg3[%c0_2, %c0_3] : memref<16x32xbf16, #tpu.memory_space<vmem>>, vector<16x32xbf16>
    %cst = arith.constant dense<0.000000e+00> : vector<16x128xf32>
    %10 = tpu.matmul %9, %8, %cst {dimension_numbers = #tpu.dot_dimension_numbers<[1], [0], [0], [1], [0, 0, 1, 1], [], []>} : vector<16x32xbf16>, vector<32x128xbf16>, vector<16x128xf32> -> vector<16x128xf32>
    %c0_4 = arith.constant 0 : index
    %c0_5 = arith.constant 0 : index
    %11 = vector.load %arg4[%c0_4, %c0_5] : memref<16x1xf32, #tpu.memory_space<vmem>>, vector<16x1xf32>
    %12 = vector.broadcast %11 : vector<16x1xf32> to vector<16x128xf32>
    %13 = arith.addf %10, %12 : vector<16x128xf32>
    %14 = arith.truncf %13 : vector<16x128xf32> to vector<16x128xbf16>
    %c0_6 = arith.constant 0 : index
    %c0_7 = arith.constant 0 : index
    %15 = vector.load %arg11[%c0_6, %c0_7] : memref<16x256xbf16, #tpu.memory_space<vmem>>, vector<16x256xbf16>
    %cst_8 = arith.constant dense<0.000000e+00> : vector<128x256xf32>
    %16 = tpu.matmul %14, %15, %cst_8 {dimension_numbers = #tpu.dot_dimension_numbers<[0], [0], [1], [1], [0, 1, 1, 1], [], []>} : vector<16x128xbf16>, vector<16x256xbf16>, vector<128x256xf32> -> vector<128x256xf32>
    %cst_9 = arith.constant dense<0xFF800000> : vector<128xf32>
    %17 = vector.multi_reduction <maximumf>, %16, %cst_9 [1] : vector<128x256xf32> to vector<128xf32>
    %18 = vector.shape_cast %17 : vector<128xf32> to vector<128x1xf32>
    %19 = vector.broadcast %18 : vector<128x1xf32> to vector<128x256xf32>
    %20 = arith.subf %16, %19 : vector<128x256xf32>
    %21 = math.exp %20 : vector<128x256xf32>
    %cst_10 = arith.constant dense<0.000000e+00> : vector<128xf32>
    %22 = vector.multi_reduction <add>, %21, %cst_10 [1] : vector<128x256xf32> to vector<128xf32>
    %23 = vector.shape_cast %22 : vector<128xf32> to vector<128x1xf32>
    %24 = tpu.reciprocal %23 {approx = true} : vector<128x1xf32> -> vector<128x1xf32>
    %25 = vector.broadcast %24 : vector<128x1xf32> to vector<128x256xf32>
    %26 = arith.mulf %21, %25 : vector<128x256xf32>
    %27 = arith.truncf %26 : vector<128x256xf32> to vector<128x256xbf16>
    %c0_11 = arith.constant 0 : index
    %c0_12 = arith.constant 0 : index
    %28 = vector.load %arg12[%c0_11, %c0_12] : memref<32x256xbf16, #tpu.memory_space<vmem>>, vector<32x256xbf16>
    %cst_13 = arith.constant dense<0.000000e+00> : vector<32x128xf32>
    %29 = tpu.matmul %28, %27, %cst_13 {dimension_numbers = #tpu.dot_dimension_numbers<[1], [1], [0], [0], [0, 0, 1, 0], [], []>} : vector<32x256xbf16>, vector<128x256xbf16>, vector<32x128xf32> -> vector<32x128xf32>
    %c0_14 = arith.constant 0 : index
    %30 = memref.load %arg9[%c0_14] : memref<1xf32, #tpu.memory_space<smem>>
    %31 = vector.broadcast %30 : f32 to vector<32x128xf32>
    %32 = arith.mulf %31, %29 : vector<32x128xf32>
    %33 = arith.addf %32, %7 : vector<32x128xf32>
    %c0_15 = arith.constant 0 : index
    %c0_16 = arith.constant 0 : index
    %c0_17 = arith.constant 0 : index
    %34 = vector.load %arg10[%c0_15, %c0_16, %c0_17] : memref<1x32x128xf32, #tpu.memory_space<vmem>>, vector<1x32x128xf32>
    %35 = vector.shape_cast %34 : vector<1x32x128xf32> to vector<32x128xf32>
    %36 = vector.shape_cast %33 : vector<32x128xf32> to vector<1x32x128xf32>
    tpu.vector_store %arg10[%c0_15, %c0_16, %c0_17], %36 {strides = array<i32>} : memref<1x32x128xf32, #tpu.memory_space<vmem>>, vector<1x32x128xf32>,
    return
  }
  func.func @transform_0(%arg0: i32, %arg1: i32) -> (i32, i32, i32) {
    %c0_i32 = arith.constant 0 : i32
    %c0_i32_0 = arith.constant 0 : i32
    %c0_i32_1 = arith.constant 0 : i32
    return %arg0, %c0_i32, %c0_i32_0 : i32, i32, i32
  }
  func.func @transform_1(%arg0: i32, %arg1: i32) -> (i32, i32) {
    %c0_i32 = arith.constant 0 : i32
    %c0_i32_0 = arith.constant 0 : i32
    %c0_i32_1 = arith.constant 0 : i32
    return %c0_i32, %c0_i32_0 : i32, i32
  }
  func.func @transform_2(%arg0: i32, %arg1: i32) -> (i32, i32) {
    %c0_i32 = arith.constant 0 : i32
    %c0_i32_0 = arith.constant 0 : i32
    %c0_i32_1 = arith.constant 0 : i32
    return %c0_i32, %c0_i32_0 : i32, i32
  }
  func.func @transform_3(%arg0: i32, %arg1: i32) -> (i32, i32) {
    %c0_i32 = arith.constant 0 : i32
    %c0_i32_0 = arith.constant 0 : i32
    %c0_i32_1 = arith.constant 0 : i32
    return %c0_i32, %c0_i32_0 : i32, i32
  }
  func.func @transform_4(%arg0: i32, %arg1: i32) -> (i32, i32) {
    %c0_i32 = arith.constant 0 : i32
    %c0_i32_0 = arith.constant 0 : i32
    %c0_i32_1 = arith.constant 0 : i32
    return %c0_i32, %c0_i32_0 : i32, i32
  }
  func.func @transform_5(%arg0: i32, %arg1: i32) -> (i32, i32) {
    %c0_i32 = arith.constant 0 : i32
    %c0_i32_0 = arith.constant 0 : i32
    %c0_i32_1 = arith.constant 0 : i32
    return %c0_i32, %c0_i32_0 : i32, i32
  }
  func.func @transform_6(%arg0: i32, %arg1: i32) -> (i32, i32) {
    %c0_i32 = arith.constant 0 : i32
    %c0_i32_0 = arith.constant 0 : i32
    %c0_i32_1 = arith.constant 0 : i32
    return %c0_i32, %c0_i32_0 : i32, i32
  }
  func.func @transform_7(%arg0: i32, %arg1: i32) -> i32 {
    %c0_i32 = arith.constant 0 : i32
    %c0_i32_0 = arith.constant 0 : i32
    return %c0_i32 : i32
  }
  func.func @transform_8(%arg0: i32, %arg1: i32) -> (i32, i32, i32) {
    %c0_i32 = arith.constant 0 : i32
    %c0_i32_0 = arith.constant 0 : i32
    return %arg0, %c0_i32, %arg1 : i32, i32, i32
  }
}

</mosaic_0001>

<bundles_post_ra>
// kernel: tpu_custom_call.1
= control target key start
LH: loop header
LB: loop body
LE: loop exit
PB: predicated region body
PF: predicated region fallthrough
CT: control target
= control target key end

     0   :  { %s2190_s0 = inlined_call_operand.hbm [shape: f32[2,32,256], index: 0, kind: input, shape index: {}]   ;;  %s2191_s1 = inlined_call_operand.vmem [shape: bf16[16,32], index: 1, kind: input, shape index: {}]   ;;  %s2192_s2 = inlined_call_operand.vmem [shape: f32[16,1], index: 2, kind: input, shape index: {}]   ;;  %s2193_s3 = inlined_call_operand.vmem [shape: bf16[16,32], index: 3, kind: input, shape index: {}]   ;;  %s2194_s4 = inlined_call_operand.vmem [shape: f32[16,1], index: 4, kind: input, shape index: {}]   ;;  %s2195_s5 = inlined_call_operand.vmem [shape: bf16[32,32], index: 5, kind: input, shape index: {}]   ;;  %s2196_s6 = inlined_call_operand.vmem [shape: f32[32,1], index: 6, kind: input, shape index: {}]   ;;  %s2197_s7 = inlined_call_operand.<no memory space> [shape: f32[1], index: 7, kind: input, shape index: {}]   ;;  %s2198_s8 = inlined_call_operand.hbm [shape: f32[2,32,256], index: 8, kind: output, shape index: {}]  }
   0x1   :  { %13 = sst [smem:[#allocation4]] %s2197_s7 }
   0x2   :  { %14 = vsyncpa [#allocation6], 0 }
   0x3   :  { %15 = vsyncpa [#allocation7], 0 }
   0x4   :  { %17 = vsyncpa [#allocation7 + $0x1], 0  ;;  %s1633_s29 = smov 0   ;;  %s1635_s30 = smov 0  }
   0x5   :  { %s1637_s9 = smov 0   ;;  %s1639_s10 = smov 0  }
   0x6   :  { %s1641_s11 = smov 0   ;;  %s1643_s12 = smov 0  }
   0x7   :  { %s1645_s13 = smov 0   ;;  %s1647_s14 = smov 0  }
   0x8   :  { %s1649_s7 = smov 0   ;;  %s1651_s15 = smov 0  }
   0x9   :  { %s1653_s16 = smov 0  }
   0xa LB: > { %2208 = sst [smem:[#allocation11_spill]] %s1532_s29  ;;  %s1163_s17 = sadd.s32 4294967295, %s1572_s16   ;;  %s1572_s16 = sphi %s1653_s16, %s23_s16   ;;  %s1568_s15 = sphi %s1651_s15, %s2227_s15   ;;  %s1564_s7 = sphi %s1649_s7, %s2226_s7   ;;  %s1560_s14 = sphi %s1647_s14, %s2225_s14   ;;  %s1556_s13 = sphi %s1645_s13, %s2224_s13   ;;  %s1552_s12 = sphi %s1643_s12, %s2233_s12   ;;  %s1548_s11 = sphi %s1641_s11, %s2232_s11   ;;  %s1544_s10 = sphi %s1639_s10, %s2231_s10   ;;  %s1540_s9 = sphi %s1637_s9, %s2230_s9   ;;  %s1536_s30 = sphi %s1635_s30, %s2229_s30   ;;  %s1532_s29 = sphi %s1633_s29, %s2228_s29  }
   0xb   : > { %2209 = sst [smem:[#allocation12_spill]] %s1564_s7  ;;  %s1164_s18 = sadd.s32 4294967294, %s1572_s16  }
   0xc   : > { %2210 = sst [smem:[#allocation13_spill]] %s1568_s15  ;;  %s32_s19 = sadd.s32 1, %s1564_s7 }
   0xd   : > { %p33_p0 = scmp.ge.s32.totalorder %s32_s19, 2  ;;  %s35_s20 = sadd.s32 1, %s1568_s15 }
   0xe   : > { %s42_s21 = sadd.s32 1, %s1552_s12  ;;  %p55_p1 = scmp.ne.s32.totalorder %s1548_s11, %s1544_s10 }
   0xf   : > { %s2235_s19 = smov (%p33_p0, %s32_s19), 0  ;;  %s2237_s20 = smov (!%p33_p0, %s35_s20), %s1568_s15 }
  0x10   : > { %2211 = sst [smem:[#allocation14_spill]] %s2235_s19  ;;  %p1698_p2 = scmp.eq.s32.totalorder %s1163_s17, 0 }
  0x11   : > { %s213_s23 = ssub.s32 %s1564_s7, %s2235_s19  ;;  %p37_p3 = scmp.ge.s32.totalorder %s2237_s20, 2 }
  0x12   : > { %s217_s24 = sadd.s32 1, %s1540_s9  ;;  %p227_p4 = scmp.ne.s32.totalorder %s1540_s9, %s1536_s30 }
  0x13   : > { %p228_p5 = scmp.eq.s32.totalorder %s1163_s17, 3  ;;  %s2239_s20 = smov (%p37_p3, %s2237_s20), 0 }
  0x14   : > { %2213 = sst [smem:[#allocation15_spill]] %s2239_s20  ;;  %p233_p7 = scmp.ne.s32.totalorder %s1536_s30, %s1532_s29 }
  0x15   : > { %p1709_p6 = por %p228_p5, %p227_p4  ;;  %s39_s26 = ssub.s32 %s1568_s15, %s2239_s20 }
  0x16   : > { %p234_p8 = scmp.eq.s32.totalorder %s1164_s18, 3  ;;  %p40_p9 = scmp.eq.s32.totalorder %s39_s26, 0 }
  0x17   : > { %s2214_s25 = scalar_select %p1709_p6, 1, 0 }
  0x18   : > { %s214_s27 = sor.u32 %s213_s23, %s39_s26  ;;  %p1717_p11 = por %p234_p8, %p233_p7 }
  0x19   : > { %p215_p10 = scmp.eq.s32.totalorder %s214_s27, 0  ;;  %p1165_p12 = scmp.ge.s32.totalorder %s1572_s16, 1 }
  0x1a   : > { %s2215_s28 = scalar_select %p1717_p11, 1, 0 }
  0x1b   : > { %s1722_s19 = scalar_select %p40_p9, %s1552_s12, %s42_s21  }
  0x1c   : > { %s1725_s17 = scalar_select %p215_p10, %s1540_s9, %s217_s24  }
  0x1d   : > { %p241_p13 = scmp.lt.s32.totalorder %s1572_s16, 5  ;;  %s1194_s7 = sshll.u32 %s1560_s14, 10 }
  0x1e   : > { %p1735_p0 = por %p1698_p2, %p55_p1  ;;  %s1574_s23 = smov [#allocation5]  }
  0x1f   : > { %p1739_p3 = pnand %p1165_p12, %p241_p13  ;;  %s256_s21 = sshll.u32 %s1574_s23, 4  ;;  %s1750_s21 = int_to_ptr.vmem [resolvable:$true] %s256_s21 }
  0x20   : > { %s2216_s29 = scalar_select %p1735_p0, 1, 0 }
  0x21   : > { %s2217_s18 = scalar_select %p1739_p3, 1, 0 }
  0x22   : > { %p1210_p4 = pneg %p1739_p3  ;;  %s1748_s27 = scalar_lea.hbm %s2190_s0, %s1194_s7 }
  0x23   : > { %s1420_s22 = scalar_lea.hbm %s1748_s27, 1024  ;;  %s1425_s24 = scalar_lea.hbm %s2190_s0, 2048 }
  0x24   : > { %p1754_p1 = pnand %p1210_p4, %p1735_p0  ;;  %p1421_p2 = scmp.ne.s32.totalorder %s1748_s27, %s1420_s22 }
  0x25   : > { %p1426_p9 = scmp.lt.u32.totalorder %s1748_s27, %s2190_s0  ;;  %p1427_p10 = scmp.lt.u32.totalorder %s1425_s24, %s1420_s22 }
  0x26   : > { %p1422_p5 = pneg %p1754_p1  ;;  %p1429_p13 = scmp.lt.u32.totalorder %s1420_s22, %s1748_s27 }
  0x27   : > { %p1428_p12 = por %p1427_p10, %p1426_p9 }
  0x28   : > { %p1423_p7 = pnand %p1422_p5, %p1421_p2 }
  0x29   : > { %p1430_p4 = por %p1429_p13, %p1428_p12 }
  0x2a   : > { %p1424_p8 = pneg %p1423_p7 }
  0x2c   : > { %p1431_p11 = pnand %p1430_p4, %p1424_p8 }
  0x2e   : > { %1434 = shalt.err (!%p1431_p11)
}
  0x2f   : > { %s1435_s15 = scalar_lea.vmem %s1750_s21, 1024  ;;  %p1443_p0 = scmp.lt.s32.totalorder %s1750_s21, %s1750_s21 }
  0x30   : > { %p1436_p2 = scmp.ne.s32.totalorder %s1750_s21, %s1435_s15  ;;  %p1444_p3 = scmp.lt.s32.totalorder %s1435_s15, %s1435_s15 }
  0x32   : > { %p1438_p7 = pnand %p1436_p2, %p1422_p5  ;;  %p1445_p9 = por %p1444_p3, %p1443_p0 }
  0x34   : > { %p1439_p6 = pneg %p1438_p7 }
  0x36   : > { %p1446_p10 = pnand %p1445_p9, %p1439_p6 }
  0x38   : > { %1449 = shalt.err (!%p1446_p10)
}
  0x39   : > { %s1575_s20 = smov 256   ;;  %s1576_s22 = smov 16  }
  0x3a   : > { %1213 = dma.hbm_to_vmem [thread:$0]  (!%p1754_p1), %s1748_s27, 1024, %s1750_s21, [#allocation6], %s1575_s20, %s1575_s20, %s1576_s22  }
  0x3b   : > { %p2219_p11 = scmp.ne.s32.totalorder %s2217_s18, 0 }
  0x3c   : > { %p2220_p8 = scmp.ne.s32.totalorder (!%p2219_p11), %s2216_s29, 0 }
  0x3d   : > { %293 = sbr.rel (%p2219_p11) target bundleno = 1486 (0x5ce), region = 52 }
  0x44   : > { %1523 = dma.done.wait (%p2220_p8), [#allocation6], 1024  }
  0x45   : > { %1525 = vsyncadd (%p2220_p8), [#allocation6], 4294966272  ;;  %s319_s15 = sand.u32 1, %s1536_s30   ;;  %p1170_p6 = scmp.ne.s32.totalorder %s1556_s13, 0 }
  0x46   : > { %s1169_s7 = sshll.u32 %s319_s15, 5  ;;  %v328_v0 = vld [vmem:[#allocation5 + $0x8] sm:$0xff] (!%p1170_p6)  ;;  %v330_v1 = vld [vmem:[#allocation5 + $0x18] sm:$0xff] (!%p1170_p6)  ;;  %v327_v2 = vld [vmem:[#allocation5] sm:$0xff] (!%p1170_p6)  ;;  %v1577_v7 = vmov (!%p1170_p6), 0   ;;  %vm358_vm0 = vcmask (!%p1170_p6), 261120  }
  0x47   : > { %s1793_s23 = scalar_lea.vmem [#allocation8], %s1169_s7  ;;  %326 = sbr.rel (%p1170_p6) target bundleno = 309 (0x135), region = 60  ;;  %v336_v3 = vpack.c.bf16 (!%p1170_p6), %v330_v1, %v328_v0  ;;  %v329_v4 = vld [vmem:[#allocation5 + $0x10] sm:$0xff] (!%p1170_p6)  ;;  %v332_v5 = vld [vmem:[#allocation5 + $0x28] sm:$0xff] (!%p1170_p6)  ;;  %v334_v6 = vld [vmem:[#allocation5 + $0x38] sm:$0xff] (!%p1170_p6)  ;;  %394 = vmatprep.mubr.bf16.mxu0 (!%p1170_p6), %v1577_v7  ;;  %485 = vmatprep.mubr.bf16.mxu1 (!%p1170_p6), %v1577_v7 }
  0x48   : > { %v335_v8 = vpack.c.bf16 (!%p1170_p6), %v329_v4, %v327_v2  ;;  %v338_v9 = vpack.c.bf16 (!%p1170_p6), %v334_v6, %v332_v5  ;;  %v331_v10 = vld [vmem:[#allocation5 + $0x20] sm:$0xff] (!%p1170_p6)  ;;  %v333_v11 = vld [vmem:[#allocation5 + $0x30] sm:$0xff] (!%p1170_p6)  ;;  %1318 = vset.pattern.permute.xlu1 (!%p1170_p6), %v1577_v7  ;;  %1317 = vset.pattern.permute.xlu0 (!%p1170_p6), %v1577_v7  ;;  %v414_v17 = vld [vmem:[%s2196_s6 + $0x8] sm:$0xff] (!%p1170_p6) }
  0x49   : > { %362 = vmatprep.subr.bf16.mxu0 (!%p1170_p6), %v336_v3  ;;  %453 = vmatprep.subr.bf16.mxu1 (!%p1170_p6), %v336_v3  ;;  %v337_v12 = vpack.c.bf16 (!%p1170_p6), %v333_v11, %v331_v10  ;;  %v413_v13 = vld [vmem:[%s2196_s6] sm:$0xff] (!%p1170_p6)  ;;  %v342_v18 = vld [vmem:[%s2194_s4 + $0x8] sm:$0xff] (!%p1170_p6)  ;;  %v416_v19 = vld [vmem:[%s2196_s6 + $0x18] sm:$0xff] (!%p1170_p6) }
  0x4a   : > { %363 = vmatpush1.bf16.msra.mxu0 (!%p1170_p6), %v335_v8  ;;  %454 = vmatpush1.bf16.msra.mxu1 (!%p1170_p6), %v335_v8  ;;  %v341_v14 = vld [vmem:[%s2194_s4] sm:$0xff] (!%p1170_p6)  ;;  %v415_v20 = vld [vmem:[%s2196_s6 + $0x10] sm:$0xff] (!%p1170_p6)  ;;  %v1321_v21 = vld [vmem:[%s2195_s5 + $0x8] sm:$0xff] (!%p1170_p6)  }
  0x4b   : > { %364 = vmatprep.subr.bf16.mxu0 (!%p1170_p6), %v338_v9  ;;  %455 = vmatprep.subr.bf16.mxu1 (!%p1170_p6), %v338_v9  ;;  %v1319_v15 = vld [vmem:[%s2193_s3] sm:$0xff] (!%p1170_p6)  }
  0x4c   : > { %419 = vperm.xlu1 (!%p1170_p6), %1318, %v413_v13   ;;  %v1320_v16 = vld [vmem:[%s2195_s5] sm:$0xff] (!%p1170_p6)   ;;  %345 = vperm.xlu0 (!%p1170_p6), %1317, %v341_v14  }
  0x4e   : > { %365 = vmatpush1.bf16.msra.mxu0 %v337_v12  ;;  %456 = vmatpush1.bf16.msra.mxu1 %v337_v12 }
  0x50   : > { %424 = vperm.xlu1 %1318, %v414_v17   ;;  %350 = vperm.xlu0 %1317, %v342_v18  }
  0x51   : > { %1172 = vmatmul.mubr.msk.bf16.vlgmr.msra.gmra.mrb[0].mxu0 %vm358_vm0, %v1319_v15  ;;  %1175 = vmatmul.mubr.msk.bf16.vlgmr.msra.gmra.mrb[0].mxu1 %vm358_vm0, %v1320_v16 }
  0x52   : > { %495 = vmatprep.mubr.bf16.mxu1 %v1577_v7 }
  0x54   : > { %434 = vperm.xlu1 %1318, %v416_v19   ;;  %429 = vperm.xlu0 %1317, %v415_v20  }
  0x59   : > { %1176 = vmatmul.mubr.msk.bf16.gmra.mrb[4].mxu1 %vm358_vm0, %v1321_v21 }
  0xcb   : > { %v420_v22 = vpop.permute.xlu1 %419  ;;  %v346_v23 = vpop.permute.xlu0 %345 }
  0xcf   : > { %v425_v24 = vpop.permute.xlu1 %424  ;;  %v351_v25 = vpop.permute.xlu0 %350 }
  0xd3   : > { %v435_v47 = vpop.permute.xlu1 %434  ;;  %v430_v49 = vpop.permute.xlu0 %429 }
 0x124   : > { %v396_v26 = vpop.f32.mrb[0].mxu0  ;;  %v487_v27 = vpop.f32.mrb[0].mxu1 }
 0x125   : > { %v397_v28 = vadd.f32 %v396_v26, %v346_v23  ;;  %v398_v29 = vpop.f32.mrb[1].mxu0  ;;  %v489_v30 = vpop.f32.mrb[1].mxu1  ;;  %v488_v34 = vadd.f32 %v487_v27, %v420_v22 }
 0x126   : > { %v399_v31 = vadd.f32 %v398_v29, %v346_v23  ;;  %v400_v32 = vpop.f32.mrb[2].mxu0  ;;  %v491_v33 = vpop.f32.mrb[2].mxu1  ;;  %v490_v39 = vadd.f32 %v489_v30, %v420_v22 }
 0x127   : > { %v401_v35 = vadd.f32 %v400_v32, %v351_v25  ;;  %v492_v36 = vadd.f32 %v491_v33, %v425_v24  ;;  %v402_v37 = vpop.f32.mrb[3].mxu0  ;;  %v493_v38 = vpop.f32.mrb[3].mxu1 }
 0x128   : > { %v403_v40 = vadd.f32 %v402_v37, %v351_v25  ;;  %v494_v41 = vadd.f32 %v493_v38, %v425_v24 }
 0x129   : > { %v405_v42 = vpack.c.bf16 %v401_v35, %v397_v28  ;;  %v506_v43 = vpack.c.bf16 %v492_v36, %v488_v34 }
 0x12a   : > { %v406_v44 = vpack.c.bf16 %v403_v40, %v399_v31  ;;  %v507_v45 = vpack.c.bf16 %v494_v41, %v490_v39 }
 0x12b   : > { %407 = vst [vmem:[#allocation2] sm:$0xff] %v405_v42  ;;  %510 = vst [vmem:[#allocation3] sm:$0xff] %v506_v43 }
 0x12c   : > { %408 = vst [vmem:[#allocation2 + $0x8] sm:$0xff] %v406_v44  ;;  %511 = vst [vmem:[#allocation3 + $0x8] sm:$0xff] %v507_v45  ;;  %v497_v46 = vpop.f32.mrb[4].mxu1 }
 0x12d   : > { %v499_v48 = vpop.f32.mrb[5].mxu1  ;;  %v498_v51 = vadd.f32 %v497_v46, %v430_v49 }
 0x12e   : > { %v501_v50 = vpop.f32.mrb[6].mxu1  ;;  %v500_v54 = vadd.f32 %v499_v48, %v430_v49 }
 0x12f   : > { %v502_v52 = vadd.f32 %v501_v50, %v435_v47  ;;  %v503_v53 = vpop.f32.mrb[7].mxu1 }
 0x130   : > { %v504_v55 = vadd.f32 %v503_v53, %v435_v47 }
 0x131   : > { %v508_v56 = vpack.c.bf16 %v502_v52, %v498_v51 }
 0x132   : > { %v509_v57 = vpack.c.bf16 %v504_v55, %v500_v54 }
 0x133   : > { %512 = vst [vmem:[#allocation3 + $0x10] sm:$0xff] %v508_v56 }
 0x134   : > { %513 = vst [vmem:[#allocation3 + $0x18] sm:$0xff] %v509_v57 }
 0x135 PF: > { %s1177_s22 = sshll.u32 %s1556_s13, 7  ;;  %v1578_v58 = vmov 0.0   ;;  %vm1579_vm1 = vmmov 0   ;;  %v527_v59 = vld [vmem:[%s2192_s2] sm:$0xff]  ;;  %v1580_v60 = vmov 0   ;;  %v528_v61 = vld [vmem:[%s2192_s2 + $0x8] sm:$0xff] }
 0x136   : > { %1198 = vmatprep.subr.bf16.mxu0 %v1578_v58  ;;  %s515_s7 = sshra.s32 %s1177_s22, 7  ;;  %1202 = vmatprep.mubr.msk.bf16.mxu0 %vm1579_vm1, %v1578_v58  ;;  %v1323_v4 = vld [vmem:[%s2191_s1] sm:$0xff]   ;;  %vm544_vm2 = vcmask 261120   ;;  %v591_v5 = vld [vmem:[#allocation2 + $0x8] sm:$0xff]  ;;  %vm608_vm3 = vcmask 130048   ;;  %s1055_s22 = sld [smem:[#allocation4]] }
 0x137   : > { %s1178_s21 = sshll.u32 %s515_s7, 3  ;;  %1322 = vset.pattern.permute.xlu0 %v1580_v60  ;;  %v590_v6 = vld [vmem:[#allocation2] sm:$0xff]  ;;  %s1190_s7 = sshll.u32 %s1560_s14, 3 }
 0x138   : > { %531 = vperm.xlu0 %1322, %v527_v59   ;;  %s518_s24 = scalar_lea.vmem [#allocation5], %s1178_s21  ;;  %s1081_s29 = sadd.s32 %s1556_s13, %s1190_s7 }
 0x139   : > { %v1830_v62 = vld [vmem:[%s518_s24] sm:$0xff]  ;;  %v1832_v63 = vld [vmem:[%s518_s24 + $0x10] sm:$0xff]  ;;  %s1191_s18 = sshll.u32 %s1081_s29, 7  ;;  %s1084_s21 = sshll.u32 %s1793_s23, 4  ;;  %s2122_s21 = int_to_ptr.vmem [resolvable:$true] %s1084_s21 }
 0x13a   : > { %v1834_v0 = vld [vmem:[%s518_s24 + $0x20] sm:$0xff]  ;;  %v523_v1 = vpack.c.bf16 %v1832_v63, %v1830_v62  ;;  %v1838_v2 = vld [vmem:[%s518_s24 + $0x30] sm:$0xff]  ;;  %s2120_s10 = scalar_lea.hbm %s2198_s8, %s1191_s18  ;;  %s2129_s13 = scalar_lea.sflag [#allocation7], %s319_s15 }
 0x13b   : > { %v524_v3 = vpack.c.bf16 %v1838_v2, %v1834_v0  ;;  %s1450_s24 = scalar_lea.vmem %s2122_s21, 512  ;;  %p2221_p3 = scmp.ne.s32.totalorder %s2214_s25, 0 }
 0x13c   : > { %1199 = vmatpush3.bf16.msra.mxu0 %v523_v1  ;;  %536 = vperm.xlu0 %1322, %v528_v61   ;;  %p1451_p0 = scmp.ne.s32.totalorder %s2122_s21, %s1450_s24  ;;  %s1581_s26 = smov [#allocation8]  }
 0x13d   : > { %1200 = vmatprep.subr.bf16.mxu0 %v1578_v58  ;;  %s1454_s20 = sshll.u32 %s1581_s26, 4  ;;  %s1455_s20 = int_to_ptr.vmem [resolvable:$false] %s1454_s20 }
 0x13e   : > { %p1452_p1 = pnand %p1451_p0, %p2221_p3  ;;  %p1457_p12 = scmp.lt.s32.totalorder %s2122_s21, %s1455_s20 }
 0x140   : > { %1201 = vmatpush3.bf16.msra.mxu0 %v524_v3  ;;  %p1453_p5 = pneg %p1452_p1 }
 0x141   : > { %633 = vmatprep.subr.bf16.mxu0 %v591_v5 }
 0x143   : > { %1203 = vmatmul.mubr.msk.bf16.vlgmr.msra.gmra.mrb[0].mxu0 %vm544_vm2, %v1323_v4 }
 0x144   : > { %665 = vmatprep.mubr.bf16.mxu0 %v1580_v60  ;;  %634 = vmatpush1.bf16.msra.mxu0 %v590_v6 }
 0x1b7   : > { %v532_v7 = vpop.permute.xlu0 %531 }
 0x1bb   : > { %v537_v10 = vpop.permute.xlu0 %536 }
 0x216   : > { %v582_v8 = vpop.f32.mrb[0].mxu0 }
 0x217   : > { %v1204_v9 = vpop.f32.mrb[1].mxu0  ;;  %v583_v12 = vadd.f32 %v582_v8, %v532_v7 }
 0x218   : > { %v585_v11 = vpop.f32.mrb[2].mxu0 }
 0x219   : > { %v586_v13 = vadd.f32 %v585_v11, %v537_v10  ;;  %v1205_v14 = vpop.f32.mrb[3].mxu0 }
 0x21b   : > { %v589_v15 = vpack.c.bf16 %v586_v13, %v583_v12 }
 0x21d   : > { %592 = vxpose.xlu1.c.b16.start.end [1/1] (short) %v589_v15, 128 }
 0x283   : > { %v600_v16 = vpop.trf.xlu1 }
 0x284   : > { %1181 = vmatmul.mubr.msk.bf16.vlgmr.msra.gmra.mrb[4].mxu0 %vm608_vm3, %v600_v16 }
 0x285   : > { %675 = vmatprep.mubr.bf16.mxu0 %v1580_v60 }
 0x287   : > { %v601_v17 = vpop.trf.xlu1 }
 0x28b   : > { %v602_v18 = vpop.trf.xlu1 }
 0x28c   : > { %1182 = vmatmul.mubr.msk.bf16.gmra.mrb[8].mxu0 %vm608_vm3, %v601_v17 }
 0x28d   : > { %685 = vmatprep.mubr.bf16.mxu0 %v1580_v60 }
 0x28f   : > { %v603_v19 = vpop.trf.xlu1 }
 0x293   : > { %v604_v20 = vpop.trf.xlu1 }
 0x294   : > { %1183 = vmatmul.mubr.msk.bf16.gmra.mrb[12].mxu0 %vm608_vm3, %v602_v18 }
 0x295   : > { %695 = vmatprep.mubr.bf16.mxu0 %v1580_v60 }
 0x297   : > { %v605_v21 = vpop.trf.xlu1 }
 0x29b   : > { %v606_v22 = vpop.trf.xlu1 }
 0x29c   : > { %1184 = vmatmul.mubr.msk.bf16.gmra.mrb[16].mxu0 %vm608_vm3, %v603_v19 }
 0x29d   : > { %705 = vmatprep.mubr.bf16.mxu0 %v1580_v60 }
 0x29f   : > { %v607_v23 = vpop.trf.xlu1 }
 0x2a4   : > { %1185 = vmatmul.mubr.msk.bf16.gmra.mrb[20].mxu0 %vm608_vm3, %v604_v20 }
 0x2a5   : > { %715 = vmatprep.mubr.bf16.mxu0 %v1580_v60 }
 0x2ac   : > { %1186 = vmatmul.mubr.msk.bf16.gmra.mrb[24].mxu0 %vm608_vm3, %v605_v21 }
 0x2ad   : > { %725 = vmatprep.mubr.bf16.mxu0 %v1580_v60 }
 0x2b4   : > { %1187 = vmatmul.mubr.msk.bf16.gmra.mrb[28].mxu0 %vm608_vm3, %v606_v22 }
 0x2b5   : > { %735 = vmatprep.mubr.bf16.mxu0 %v1580_v60 }
 0x2bc   : > { %1188 = vmatmul.mubr.msk.bf16.gmra.mrb[32].mxu0 %vm608_vm3, %v607_v23 }
 0x357   : > { %v1853_v24 = vpop.f32.mrb[4].mxu0 }
 0x358   : > { %v1855_v25 = vpop.f32.mrb[5].mxu0 }
 0x359   : > { %v1857_v26 = vpop.f32.mrb[6].mxu0  ;;  %v746_v27 = vmax.f32 %v1853_v24, %v1855_v25 }
 0x35a   : > { %v1861_v28 = vpop.f32.mrb[7].mxu0 }
 0x35b   : > { %747 = vmax.xlane.f32.xlu1 %v746_v27  ;;  %v749_v29 = vmax.f32 %v1857_v26, %v1861_v28 }
 0x35d   : > { %750 = vmax.xlane.f32.xlu0 %v749_v29 }
 0x35f   : > { %v1865_v30 = vpop.f32.mrb[8].mxu0 }
 0x360   : > { %v1867_v31 = vpop.f32.mrb[9].mxu0 }
 0x361   : > { %v1869_v32 = vpop.f32.mrb[10].mxu0  ;;  %v752_v33 = vmax.f32 %v1865_v30, %v1867_v31 }
 0x362   : > { %v1873_v34 = vpop.f32.mrb[11].mxu0 }
 0x363   : > { %753 = vmax.xlane.f32.xlu0 %v752_v33  ;;  %v755_v35 = vmax.f32 %v1869_v32, %v1873_v34 }
 0x367   : > { %756 = vmax.xlane.f32.xlu0 %v755_v35  ;;  %v1877_v36 = vpop.f32.mrb[12].mxu0 }
 0x368   : > { %v1879_v37 = vpop.f32.mrb[13].mxu0 }
 0x369   : > { %v1881_v38 = vpop.f32.mrb[14].mxu0  ;;  %v758_v39 = vmax.f32 %v1877_v36, %v1879_v37 }
 0x36a   : > { %v1885_v40 = vpop.f32.mrb[15].mxu0 }
 0x36b   : > { %759 = vmax.xlane.f32.xlu1 %v758_v39  ;;  %v761_v41 = vmax.f32 %v1881_v38, %v1885_v40 }
 0x36d   : > { %762 = vmax.xlane.f32.xlu0 %v761_v41 }
 0x36f   : > { %v1889_v42 = vpop.f32.mrb[16].mxu0 }
 0x370   : > { %v1891_v43 = vpop.f32.mrb[17].mxu0 }
 0x371   : > { %v1893_v44 = vpop.f32.mrb[18].mxu0  ;;  %v764_v45 = vmax.f32 %v1889_v42, %v1891_v43 }
 0x372   : > { %v1897_v46 = vpop.f32.mrb[19].mxu0 }
 0x373   : > { %765 = vmax.xlane.f32.xlu1 %v764_v45  ;;  %v767_v47 = vmax.f32 %v1893_v44, %v1897_v46 }
 0x375   : > { %768 = vmax.xlane.f32.xlu0 %v767_v47 }
 0x377   : > { %v1901_v48 = vpop.f32.mrb[20].mxu0 }
 0x378   : > { %v1903_v49 = vpop.f32.mrb[21].mxu0 }
 0x379   : > { %v1905_v50 = vpop.f32.mrb[22].mxu0  ;;  %v770_v51 = vmax.f32 %v1901_v48, %v1903_v49 }
 0x37a   : > { %v1909_v52 = vpop.f32.mrb[23].mxu0 }
 0x37b   : > { %771 = vmax.xlane.f32.xlu1 %v770_v51  ;;  %v773_v53 = vmax.f32 %v1905_v50, %v1909_v52 }
 0x37d   : > { %774 = vmax.xlane.f32.xlu0 %v773_v53 }
 0x37f   : > { %v1913_v54 = vpop.f32.mrb[24].mxu0 }
 0x380   : > { %v1915_v55 = vpop.f32.mrb[25].mxu0 }
 0x381   : > { %v1917_v56 = vpop.f32.mrb[26].mxu0  ;;  %v776_v57 = vmax.f32 %v1913_v54, %v1915_v55 }
 0x382   : > { %v1921_v58 = vpop.f32.mrb[27].mxu0 }
 0x383   : > { %777 = vmax.xlane.f32.xlu1 %v776_v57  ;;  %v779_v59 = vmax.f32 %v1917_v56, %v1921_v58 }
 0x385   : > { %780 = vmax.xlane.f32.xlu0 %v779_v59 }
 0x387   : > { %v1925_v60 = vpop.f32.mrb[28].mxu0 }
 0x388   : > { %v1927_v61 = vpop.f32.mrb[29].mxu0 }
 0x389   : > { %v1929_v1 = vpop.f32.mrb[30].mxu0  ;;  %v782_v3 = vmax.f32 %v1925_v60, %v1927_v61 }
 0x38a   : > { %v1933_v4 = vpop.f32.mrb[31].mxu0 }
 0x38b   : > { %783 = vmax.xlane.f32.xlu1 %v782_v3  ;;  %v785_v5 = vmax.f32 %v1929_v1, %v1933_v4 }
 0x38d   : > { %786 = vmax.xlane.f32.xlu0 %v785_v5 }
 0x38f   : > { %v1937_v6 = vpop.f32.mrb[32].mxu0 }
 0x390   : > { %v1939_v7 = vpop.f32.mrb[33].mxu0 }
 0x391   : > { %v1941_v8 = vpop.f32.mrb[34].mxu0  ;;  %v788_v9 = vmax.f32 %v1937_v6, %v1939_v7 }
 0x392   : > { %v1945_v10 = vpop.f32.mrb[35].mxu0 }
 0x393   : > { %v791_v11 = vmax.f32 %v1941_v8, %v1945_v10  ;;  %789 = vmax.xlane.f32.xlu1 %v788_v9 }
 0x395   : > { %792 = vmax.xlane.f32.xlu0 %v791_v11 }
 0x3e8   : > { %v748_v12 = vpop.xlane.xlu1 %747 }
 0x3e9   : > { %v794_v13 = vsub.f32 %v1853_v24, %v748_v12  ;;  %v795_v14 = vsub.f32 %v1855_v25, %v748_v12 }
 0x3ea   : > { %v751_v15 = vpop.xlane.xlu0 %750 }
 0x3eb   : > { %v826_v16 = vmul.f32 1.442695, %v794_v13  ;;  %v828_v17 = vmul.f32 1.442695, %v795_v14  ;;  %v796_v18 = vsub.f32 %v1857_v26, %v751_v15  ;;  %v797_v19 = vsub.f32 %v1861_v28, %v751_v15 }
 0x3ed   : > { %1324 = vpow2.f32 %v826_v16  ;;  %v830_v20 = vmul.f32 1.442695, %v796_v18  ;;  %v832_v21 = vmul.f32 1.442695, %v797_v19 }
 0x3ee   : > { %1326 = vpow2.f32 %v828_v17 }
 0x3ef   : > { %1328 = vpow2.f32 %v830_v20 }
 0x3f0   : > { %1330 = vpow2.f32 %v832_v21  ;;  %v754_v22 = vpop.xlane.xlu0 %753 }
 0x3f1   : > { %v798_v23 = vsub.f32 %v1865_v30, %v754_v22  ;;  %v799_v24 = vsub.f32 %v1867_v31, %v754_v22 }
 0x3f3   : > { %v834_v27 = vmul.f32 1.442695, %v798_v23  ;;  %v836_v25 = vmul.f32 1.442695, %v799_v24 }
 0x3f4   : > { %v757_v29 = vpop.xlane.xlu0 %756 }
 0x3f5   : > { %1332 = vpow2.f32 %v834_v27  ;;  %v800_v33 = vsub.f32 %v1869_v32, %v757_v29  ;;  %v801_v26 = vsub.f32 %v1873_v34, %v757_v29 }
 0x3f6   : > { %1334 = vpow2.f32 %v836_v25 }
 0x3f7   : > { %v1957_v28 = vpop.eup %1324  ;;  %v838_v35 = vmul.f32 1.442695, %v800_v33  ;;  %v840_v39 = vmul.f32 1.442695, %v801_v26 }
 0x3f8   : > { %v1959_v41 = vpop.eup %1326  ;;  %v760_v45 = vpop.xlane.xlu1 %759 }
 0x3f9   : > { %v1961_v47 = vpop.eup %1328  ;;  %1336 = vpow2.f32 %v838_v35  ;;  %v802_v30 = vsub.f32 %v1877_v36, %v760_v45  ;;  %v803_v31 = vsub.f32 %v1879_v37, %v760_v45  ;;  %v890_v32 = vadd.f32 %v1959_v41, %v1957_v28 }
 0x3fa   : > { %v1967_v51 = vpop.eup %1330  ;;  %1338 = vpow2.f32 %v840_v39  ;;  %v763_v34 = vpop.xlane.xlu0 %762 }
 0x3fb   : > { %v842_v53 = vmul.f32 1.442695, %v802_v30  ;;  %v844_v57 = vmul.f32 1.442695, %v803_v31  ;;  %v804_v59 = vsub.f32 %v1881_v38, %v763_v34  ;;  %v805_v3 = vsub.f32 %v1885_v40, %v763_v34  ;;  %891 = vadd.xlane.f32.xlu1 %v890_v32 }
 0x3fc   : > { %v893_v5 = vadd.f32 %v1967_v51, %v1961_v47 }
 0x3fd   : > { %1340 = vpow2.f32 %v842_v53  ;;  %v846_v36 = vmul.f32 1.442695, %v804_v59  ;;  %v848_v37 = vmul.f32 1.442695, %v805_v3 }
 0x3fe   : > { %1342 = vpow2.f32 %v844_v57  ;;  %894 = vadd.xlane.f32.xlu0 %v893_v5 }
 0x3ff   : > { %v1973_v9 = vpop.eup %1332  ;;  %1344 = vpow2.f32 %v846_v36 }
 0x400   : > { %v1975_v11 = vpop.eup %1334  ;;  %1346 = vpow2.f32 %v848_v37  ;;  %v766_v12 = vpop.xlane.xlu1 %765 }
 0x401   : > { %v806_v38 = vsub.f32 %v1889_v42, %v766_v12  ;;  %v807_v40 = vsub.f32 %v1891_v43, %v766_v12  ;;  %v896_v13 = vadd.f32 %v1975_v11, %v1973_v9 }
 0x402   : > { %v769_v14 = vpop.xlane.xlu0 %768 }
 0x403   : > { %v1981_v15 = vpop.eup %1336  ;;  %v850_v16 = vmul.f32 1.442695, %v806_v38  ;;  %v852_v17 = vmul.f32 1.442695, %v807_v40  ;;  %v808_v18 = vsub.f32 %v1893_v44, %v769_v14  ;;  %v809_v19 = vsub.f32 %v1897_v46, %v769_v14  ;;  %897 = vadd.xlane.f32.xlu1 %v896_v13 }
 0x404   : > { %v1985_v20 = vpop.eup %1338 }
 0x405   : > { %1348 = vpow2.f32 %v850_v16  ;;  %v854_v21 = vmul.f32 1.442695, %v808_v18  ;;  %v856_v42 = vmul.f32 1.442695, %v809_v19  ;;  %v899_v43 = vadd.f32 %v1985_v20, %v1981_v15 }
 0x406   : > { %1350 = vpow2.f32 %v852_v17 }
 0x407   : > { %v1989_v22 = vpop.eup %1340  ;;  %1352 = vpow2.f32 %v854_v21  ;;  %900 = vadd.xlane.f32.xlu0 %v899_v43 }
 0x408   : > { %v1991_v23 = vpop.eup %1342  ;;  %1354 = vpow2.f32 %v856_v42  ;;  %v772_v44 = vpop.xlane.xlu1 %771 }
 0x409   : > { %v1993_v24 = vpop.eup %1344  ;;  %v810_v46 = vsub.f32 %v1901_v48, %v772_v44  ;;  %v811_v27 = vsub.f32 %v1903_v49, %v772_v44  ;;  %v902_v25 = vadd.f32 %v1991_v23, %v1989_v22 }
 0x40a   : > { %v1999_v29 = vpop.eup %1346  ;;  %v775_v33 = vpop.xlane.xlu0 %774 }
 0x40b   : > { %v858_v26 = vmul.f32 1.442695, %v810_v46  ;;  %v860_v35 = vmul.f32 1.442695, %v811_v27  ;;  %v812_v39 = vsub.f32 %v1905_v50, %v775_v33  ;;  %v813_v45 = vsub.f32 %v1909_v52, %v775_v33  ;;  %903 = vadd.xlane.f32.xlu1 %v902_v25 }
 0x40c   : > { %v905_v30 = vadd.f32 %v1999_v29, %v1993_v24 }
 0x40d   : > { %1356 = vpow2.f32 %v858_v26  ;;  %v862_v48 = vmul.f32 1.442695, %v812_v39  ;;  %v864_v31 = vmul.f32 1.442695, %v813_v45 }
 0x40e   : > { %1358 = vpow2.f32 %v860_v35  ;;  %906 = vadd.xlane.f32.xlu0 %v905_v30 }
 0x40f   : > { %v2005_v49 = vpop.eup %1348  ;;  %1360 = vpow2.f32 %v862_v48 }
 0x410   : > { %v2007_v32 = vpop.eup %1350  ;;  %1362 = vpow2.f32 %v864_v31  ;;  %v778_v34 = vpop.xlane.xlu1 %777 }
 0x411   : > { %v2009_v53 = vpop.eup %1352  ;;  %v814_v50 = vsub.f32 %v1913_v54, %v778_v34  ;;  %v815_v52 = vsub.f32 %v1915_v55, %v778_v34  ;;  %v908_v57 = vadd.f32 %v2007_v32, %v2005_v49 }
 0x412   : > { %v2015_v59 = vpop.eup %1354  ;;  %v781_v3 = vpop.xlane.xlu0 %780 }
 0x413   : > { %v866_v5 = vmul.f32 1.442695, %v814_v50  ;;  %v868_v36 = vmul.f32 1.442695, %v815_v52  ;;  %v816_v37 = vsub.f32 %v1917_v56, %v781_v3  ;;  %v817_v12 = vsub.f32 %v1921_v58, %v781_v3  ;;  %909 = vadd.xlane.f32.xlu1 %v908_v57 }
 0x414   : > { %v911_v38 = vadd.f32 %v2015_v59, %v2009_v53 }
 0x415   : > { %1364 = vpow2.f32 %v866_v5  ;;  %v870_v54 = vmul.f32 1.442695, %v816_v37  ;;  %v872_v40 = vmul.f32 1.442695, %v817_v12 }
 0x416   : > { %1366 = vpow2.f32 %v868_v36  ;;  %912 = vadd.xlane.f32.xlu0 %v911_v38 }
 0x417   : > { %v2021_v55 = vpop.eup %1356  ;;  %1368 = vpow2.f32 %v870_v54 }
 0x418   : > { %v2023_v13 = vpop.eup %1358  ;;  %1370 = vpow2.f32 %v872_v40  ;;  %v784_v14 = vpop.xlane.xlu1 %783 }
 0x419   : > { %v2025_v16 = vpop.eup %1360  ;;  %v818_v56 = vsub.f32 %v1925_v60, %v784_v14  ;;  %v819_v58 = vsub.f32 %v1927_v61, %v784_v14  ;;  %v914_v17 = vadd.f32 %v2023_v13, %v2021_v55  ;;  %v1003_v14 = vld [vmem:[#allocation3 + $0x8] sm:$0xff] }
 0x41a   : > { %v2031_v18 = vpop.eup %1362  ;;  %v787_v19 = vpop.xlane.xlu0 %786  ;;  %1038 = vmatprep.mubr.bf16.mxu1 %v1003_v14 }
 0x41b   : > { %v874_v21 = vmul.f32 1.442695, %v818_v56  ;;  %v876_v42 = vmul.f32 1.442695, %v819_v58  ;;  %v820_v43 = vsub.f32 %v1929_v1, %v787_v19  ;;  %v821_v44 = vsub.f32 %v1933_v4, %v787_v19  ;;  %915 = vadd.xlane.f32.xlu1 %v914_v17 }
 0x41c   : > { %v917_v46 = vadd.f32 %v2031_v18, %v2025_v16 }
 0x41d   : > { %1372 = vpow2.f32 %v874_v21  ;;  %v878_v60 = vmul.f32 1.442695, %v820_v43  ;;  %v880_v27 = vmul.f32 1.442695, %v821_v44 }
 0x41e   : > { %1374 = vpow2.f32 %v876_v42  ;;  %918 = vadd.xlane.f32.xlu0 %v917_v46 }
 0x41f   : > { %v2037_v61 = vpop.eup %1364  ;;  %1376 = vpow2.f32 %v878_v60 }
 0x420   : > { %v2039_v25 = vpop.eup %1366  ;;  %1378 = vpow2.f32 %v880_v27  ;;  %v790_v33 = vpop.xlane.xlu1 %789 }
 0x421   : > { %v2041_v26 = vpop.eup %1368  ;;  %v822_v1 = vsub.f32 %v1937_v6, %v790_v33  ;;  %v823_v4 = vsub.f32 %v1939_v7, %v790_v33  ;;  %v920_v35 = vadd.f32 %v2039_v25, %v2037_v61 }
 0x422   : > { %v2047_v39 = vpop.eup %1370  ;;  %v793_v45 = vpop.xlane.xlu0 %792 }
 0x423   : > { %v882_v30 = vmul.f32 1.442695, %v822_v1  ;;  %v884_v48 = vmul.f32 1.442695, %v823_v4  ;;  %921 = vadd.xlane.f32.xlu1 %v920_v35  ;;  %v824_v31 = vsub.f32 %v1941_v8, %v793_v45  ;;  %v825_v34 = vsub.f32 %v1945_v10, %v793_v45 }
 0x424   : > { %v923_v50 = vadd.f32 %v2047_v39, %v2041_v26 }
 0x425   : > { %1380 = vpow2.f32 %v882_v30  ;;  %v886_v6 = vmul.f32 1.442695, %v824_v31  ;;  %v888_v52 = vmul.f32 1.442695, %v825_v34 }
 0x426   : > { %1382 = vpow2.f32 %v884_v48  ;;  %924 = vadd.xlane.f32.xlu0 %v923_v50 }
 0x427   : > { %v2053_v7 = vpop.eup %1372  ;;  %1384 = vpow2.f32 %v886_v6 }
 0x428   : > { %v2055_v57 = vpop.eup %1374  ;;  %1386 = vpow2.f32 %v888_v52 }
 0x429   : > { %v2057_v3 = vpop.eup %1376  ;;  %v926_v8 = vadd.f32 %v2055_v57, %v2053_v7 }
 0x42a   : > { %v2061_v10 = vpop.eup %1378 }
 0x42b   : > { %927 = vadd.xlane.f32.xlu1 %v926_v8  ;;  %v929_v5 = vadd.f32 %v2061_v10, %v2057_v3 }
 0x42d   : > { %930 = vadd.xlane.f32.xlu0 %v929_v5 }
 0x42f   : > { %v2065_v36 = vpop.eup %1380 }
 0x430   : > { %v2067_v37 = vpop.eup %1382 }
 0x431   : > { %v2069_v12 = vpop.eup %1384  ;;  %v932_v38 = vadd.f32 %v2067_v37, %v2065_v36 }
 0x432   : > { %v2073_v54 = vpop.eup %1386 }
 0x433   : > { %933 = vadd.xlane.f32.xlu1 %v932_v38  ;;  %v935_v40 = vadd.f32 %v2073_v54, %v2069_v12 }
 0x435   : > { %936 = vadd.xlane.f32.xlu0 %v935_v40 }
 0x488   : > { %v892_v56 = vpop.xlane.xlu1 %891 }
 0x489   : > { %1388 = vrcp.f32 %v892_v56 }
 0x48b   : > { %v895_v58 = vpop.xlane.xlu0 %894 }
 0x48c   : > { %1390 = vrcp.f32 %v895_v58 }
 0x490   : > { %v898_v17 = vpop.xlane.xlu1 %897 }
 0x491   : > { %1392 = vrcp.f32 %v898_v17 }
 0x493   : > { %v1389_v19 = vpop.eup %1388 }
 0x494   : > { %v901_v21 = vpop.xlane.xlu0 %900  ;;  %v955_v43 = vmul.f32 %v1389_v19, %v1959_v41  ;;  %v954_v46 = vmul.f32 %v1389_v19, %v1957_v28 }
 0x495   : > { %1394 = vrcp.f32 %v901_v21 }
 0x496   : > { %v1391_v42 = vpop.eup %1390 }
 0x497   : > { %v957_v44 = vmul.f32 %v1391_v42, %v1967_v51  ;;  %v956_v60 = vmul.f32 %v1391_v42, %v1961_v47 }
 0x498   : > { %v904_v27 = vpop.xlane.xlu1 %903 }
 0x499   : > { %v987_v33 = vpack.c.bf16 %v957_v44, %v955_v43  ;;  %v986_v1 = vpack.c.bf16 %v956_v60, %v954_v46  ;;  %1396 = vrcp.f32 %v904_v27 }
 0x49b   : > { %1006 = vmatprep.subr.bf16.mxu1 %v987_v33  ;;  %v907_v4 = vpop.xlane.xlu0 %906  ;;  %v1393_v35 = vpop.eup %1392 }
 0x49c   : > { %1398 = vrcp.f32 %v907_v4  ;;  %1007 = vmatpush1.bf16.xpose.msra.mxu1 %v986_v1  ;;  %v959_v48 = vmul.f32 %v1393_v35, %v1975_v11  ;;  %v958_v51 = vmul.f32 %v1393_v35, %v1973_v9 }
 0x49f   : > { %v1395_v45 = vpop.eup %1394 }
 0x4a0   : > { %v910_v30 = vpop.xlane.xlu1 %909  ;;  %v961_v41 = vmul.f32 %v1395_v45, %v1985_v20  ;;  %v960_v28 = vmul.f32 %v1395_v45, %v1981_v15 }
 0x4a1   : > { %1400 = vrcp.f32 %v910_v30 }
 0x4a2   : > { %v989_v47 = vpack.c.bf16 %v961_v41, %v959_v48  ;;  %v988_v31 = vpack.c.bf16 %v960_v28, %v958_v51 }
 0x4a3   : > { %v913_v34 = vpop.xlane.xlu0 %912  ;;  %v1397_v50 = vpop.eup %1396 }
 0x4a4   : > { %1402 = vrcp.f32 %v913_v34  ;;  %1008 = vmatprep.subr.bf16.mxu1 %v989_v47  ;;  %v963_v52 = vmul.f32 %v1397_v50, %v1991_v23  ;;  %v962_v9 = vmul.f32 %v1397_v50, %v1989_v22 }
 0x4a5   : > { %1009 = vmatpush1.bf16.xpose.msra.mxu1 %v988_v31 }
 0x4a6   : > { %v1399_v6 = vpop.eup %1398 }
 0x4a7   : > { %v965_v8 = vmul.f32 %v1399_v6, %v1999_v29  ;;  %v964_v11 = vmul.f32 %v1399_v6, %v1993_v24 }
 0x4a8   : > { %v916_v20 = vpop.xlane.xlu1 %915 }
 0x4a9   : > { %v991_v5 = vpack.c.bf16 %v965_v8, %v963_v52  ;;  %1404 = vrcp.f32 %v916_v20  ;;  %v990_v38 = vpack.c.bf16 %v964_v11, %v962_v9  ;;  %v1004_v52 = vld [vmem:[#allocation3 + $0x10] sm:$0xff] }
 0x4ab   : > { %1010 = vmatprep.subr.bf16.mxu1 %v991_v5  ;;  %v919_v15 = vpop.xlane.xlu0 %918  ;;  %v1401_v40 = vpop.eup %1400 }
 0x4ac   : > { %1406 = vrcp.f32 %v919_v15  ;;  %v967_v56 = vmul.f32 %v1401_v40, %v2007_v32  ;;  %v966_v17 = vmul.f32 %v1401_v40, %v2005_v49 }
 0x4ad   : > { %1011 = vmatpush1.bf16.xpose.msra.mxu1 %v990_v38 }
 0x4ae   : > { %v1403_v14 = vpop.eup %1402 }
 0x4af   : > { %v969_v23 = vmul.f32 %v1403_v14, %v2015_v59  ;;  %v968_v29 = vmul.f32 %v1403_v14, %v2009_v53 }
 0x4b0   : > { %v922_v58 = vpop.xlane.xlu1 %921 }
 0x4b1   : > { %v993_v24 = vpack.c.bf16 %v969_v23, %v967_v56  ;;  %1408 = vrcp.f32 %v922_v58  ;;  %v992_v19 = vpack.c.bf16 %v968_v29, %v966_v17 }
 0x4b3   : > { %1012 = vmatprep.subr.bf16.mxu1 %v993_v24  ;;  %v925_v22 = vpop.xlane.xlu0 %924  ;;  %v1405_v21 = vpop.eup %1404 }
 0x4b4   : > { %1410 = vrcp.f32 %v925_v22  ;;  %v971_v43 = vmul.f32 %v1405_v21, %v2023_v13  ;;  %v970_v46 = vmul.f32 %v1405_v21, %v2021_v55 }
 0x4b5   : > { %1013 = vmatpush1.bf16.xpose.msra.mxu1 %v992_v19 }
 0x4b6   : > { %v1407_v42 = vpop.eup %1406 }
 0x4b7   : > { %v973_v32 = vmul.f32 %v1407_v42, %v2031_v18  ;;  %v972_v59 = vmul.f32 %v1407_v42, %v2025_v16 }
 0x4b8   : > { %v928_v44 = vpop.xlane.xlu1 %927 }
 0x4b9   : > { %1412 = vrcp.f32 %v928_v44  ;;  %v995_v53 = vpack.c.bf16 %v973_v32, %v971_v43  ;;  %v994_v60 = vpack.c.bf16 %v972_v59, %v970_v46 }
 0x4ba   : > { %v931_v49 = vpop.xlane.xlu0 %930 }
 0x4bb   : > { %1014 = vmatprep.subr.bf16.mxu1 %v995_v53  ;;  %1414 = vrcp.f32 %v931_v49  ;;  %v1409_v27 = vpop.eup %1408 }
 0x4bc   : > { %v975_v1 = vmul.f32 %v1409_v27, %v2039_v25  ;;  %v974_v35 = vmul.f32 %v1409_v27, %v2037_v61 }
 0x4bd   : > { %1015 = vmatpush1.bf16.xpose.msra.mxu1 %v994_v60 }
 0x4be   : > { %v1411_v33 = vpop.eup %1410 }
 0x4bf   : > { %v977_v13 = vmul.f32 %v1411_v33, %v2047_v39  ;;  %v976_v18 = vmul.f32 %v1411_v33, %v2041_v26 }
 0x4c0   : > { %v934_v4 = vpop.xlane.xlu1 %933 }
 0x4c1   : > { %1416 = vrcp.f32 %v934_v4  ;;  %v997_v16 = vpack.c.bf16 %v977_v13, %v975_v1  ;;  %v996_v30 = vpack.c.bf16 %v976_v18, %v974_v35 }
 0x4c2   : > { %v937_v45 = vpop.xlane.xlu0 %936 }
 0x4c3   : > { %v1413_v55 = vpop.eup %1412  ;;  %1016 = vmatprep.subr.bf16.mxu1 %v997_v16  ;;  %1418 = vrcp.f32 %v937_v45 }
 0x4c4   : > { %v979_v41 = vmul.f32 %v1413_v55, %v2055_v57  ;;  %v978_v26 = vmul.f32 %v1413_v55, %v2053_v7  ;;  %v1005_v7 = vld [vmem:[#allocation3 + $0x18] sm:$0xff] }
 0x4c5   : > { %v1415_v48 = vpop.eup %1414  ;;  %1017 = vmatpush1.bf16.xpose.msra.mxu1 %v996_v30 }
 0x4c6   : > { %v981_v25 = vmul.f32 %v1415_v48, %v2061_v10  ;;  %v980_v39 = vmul.f32 %v1415_v48, %v2057_v3  ;;  %v1002_v10 = vld [vmem:[#allocation3] sm:$0xff] }
 0x4c8   : > { %v999_v51 = vpack.c.bf16 %v981_v25, %v979_v41  ;;  %v998_v47 = vpack.c.bf16 %v980_v39, %v978_v26 }
 0x4ca   : > { %1018 = vmatprep.subr.bf16.mxu1 %v999_v51 }
 0x4cb   : > { %v1417_v28 = vpop.eup %1416 }
 0x4cc   : > { %v983_v31 = vmul.f32 %v1417_v28, %v2067_v37  ;;  %v982_v57 = vmul.f32 %v1417_v28, %v2065_v36  ;;  %v1056_v37 = vstv %s1055_s22  ;;  %s1456_s22 = scalar_lea.vmem %s1455_s20, 1024 }
 0x4cd   : > { %v1419_v61 = vpop.eup %1418  ;;  %1019 = vmatpush1.bf16.xpose.msra.mxu1 %v998_v47  ;;  %p1458_p13 = scmp.lt.s32.totalorder %s1456_s22, %s1450_s24 }
 0x4ce   : > { %v985_v34 = vmul.f32 %v1419_v61, %v2073_v54  ;;  %v984_v50 = vmul.f32 %v1419_v61, %v2069_v12 }
 0x4cf   : > { %p1459_p4 = por %p1458_p13, %p1457_p12 }
 0x4d0   : > { %v1001_v6 = vpack.c.bf16 %v985_v34, %v983_v31  ;;  %v1000_v3 = vpack.c.bf16 %v984_v50, %v982_v57 }
 0x4d1   : > { %p1460_p2 = pnand %p1459_p4, %p1453_p5 }
 0x4d2   : > { %1020 = vmatprep.subr.bf16.mxu1 %v1001_v6 }
 0x4d5   : > { %1021 = vmatpush1.bf16.xpose.msra.mxu1 %v1000_v3 }
 0x4dc   : > { %1039 = vmatmul.mubr.bf16.vlgmr.msra.gmra.mrb[0].mxu1 %v1002_v10 }
 0x4dd   : > { %1046 = vmatprep.mubr.bf16.mxu1 %v1005_v7 }
 0x4e4   : > { %1047 = vmatmul.mubr.bf16.gmra.mrb[4].mxu1 %v1004_v52 }
 0x5af   : > { %v1040_v54 = vpop.f32.mrb[0].mxu1 }
 0x5b0   : > { %v1057_v12 = vmul.f32 %v1056_v37, %v1040_v54  ;;  %v1042_v8 = vpop.f32.mrb[1].mxu1 }
 0x5b1   : > { %v1043_v36 = vpop.f32.mrb[2].mxu1 }
 0x5b2   : > { %v1061_v11 = vadd.f32 %v1057_v12, %v1830_v62  ;;  %v1058_v20 = vmul.f32 %v1056_v37, %v1043_v36  ;;  %v1045_v5 = vpop.f32.mrb[3].mxu1 }
 0x5b4   : > { %1065 = vst [vmem:[%s1793_s23] sm:$0xff] %v1061_v11  ;;  %v1062_v9 = vadd.f32 %v1058_v20, %v1832_v63 }
 0x5b6   : > { %1066 = vst [vmem:[%s1793_s23 + $0x8] sm:$0xff] %v1062_v9 }
 0x5b7   : > { %v1048_v15 = vpop.f32.mrb[4].mxu1 }
 0x5b8   : > { %v1059_v38 = vmul.f32 %v1056_v37, %v1048_v15  ;;  %v1050_v40 = vpop.f32.mrb[5].mxu1 }
 0x5b9   : > { %v1051_v14 = vpop.f32.mrb[6].mxu1 }
 0x5ba   : > { %v1063_v56 = vadd.f32 %v1059_v38, %v1834_v0  ;;  %v1060_v62 = vmul.f32 %v1056_v37, %v1051_v14  ;;  %v1053_v23 = vpop.f32.mrb[7].mxu1 }
 0x5bc   : > { %1067 = vst [vmem:[%s1793_s23 + $0x10] sm:$0xff] %v1063_v56  ;;  %v1064_v63 = vadd.f32 %v1060_v62, %v1838_v2 }
 0x5be   : > { %1068 = vst [vmem:[%s1793_s23 + $0x18] sm:$0xff] %v1064_v63 }
 0x5bf   : > { %1463 = shalt.err (!%p1460_p2)
}
 0x5c0   : > { %s1464_s15 = scalar_lea.hbm %s2120_s10, 512  ;;  %s1468_s29 = scalar_lea.hbm %s2198_s8, 2048 }
 0x5c1   : > { %p1465_p7 = scmp.ne.s32.totalorder %s2120_s10, %s1464_s15  ;;  %p1469_p11 = scmp.lt.u32.totalorder %s2120_s10, %s2198_s8 }
 0x5c2   : > { %p1470_p8 = scmp.lt.u32.totalorder %s1468_s29, %s1464_s15  ;;  %p1472_p0 = scmp.lt.u32.totalorder %s1464_s15, %s2120_s10 }
 0x5c3   : > { %p1466_p9 = pnand %p1465_p7, %p2221_p3 }
 0x5c4   : > { %p1471_p6 = por %p1470_p8, %p1469_p11 }
 0x5c5   : > { %p1467_p10 = pneg %p1466_p9 }
 0x5c6   : > { %p1473_p1 = por %p1472_p0, %p1471_p6 }
 0x5c8   : > { %p1474_p5 = pnand %p1473_p1, %p1467_p10 }
 0x5ca   : > { %1477 = shalt.err (!%p1474_p5)
}
 0x5cb   : > { %s1582_s27 = smov 128   ;;  %s1583_s24 = smov 256  }
 0x5cc   : > { %s1584_s26 = smov 8  }
 0x5cd   : > { %1208 = dma.vmem_to_hbm [thread:$0]  (%p2221_p3), %s2122_s21, 512, %s2120_s10, %s2129_s13, %s1582_s27, %s1583_s24, %s1584_s26  }
 0x5ce PF: > { %s2222_s20 = sld [smem:[#allocation11_spill]]  ;;  %p1218_p12 = scmp.ge.s32.totalorder %s1572_s16, 2 }
 0x5cf   : > { %p2223_p13 = scmp.ne.s32.totalorder %s2215_s28, 0 }
 0x5d1   : > { %p1215_p4 = pnand %p1218_p12, %p2223_p13 }
 0x5d4   : > { %s1099_s22 = sand.u32 1, %s2222_s20  }
 0x5d5   : > { %s1100_s15 = scalar_lea.sflag [#allocation7], %s1099_s22 }
 0x5d6   : > { %1527 = dma.done.wait (!%p1215_p4), %s1100_s15, 512  }
 0x5d7   : > { %1529 = vsyncadd (!%p1215_p4), %s1100_s15, 4294966784  ;;  %s23_s16 = sadd.s32 1, %s1572_s16   ;;  %s2224_s13 = sld [smem:[#allocation12_spill]] }
 0x5d8   : > { %p20_p2 = scmp.ge.s32.totalorder %s23_s16, 6   ;;  %s2225_s14 = sld [smem:[#allocation13_spill]] }
 0x5d9   : > { %s2226_s7 = sld [smem:[#allocation14_spill]]  ;;  %s2227_s15 = sld [smem:[#allocation15_spill]] }
 0x5da   : > { %s2228_s29 = smov %s1536_s30  ;;  %s2229_s30 = smov %s1540_s9 }
 0x5db   : > { %s2230_s9 = smov %s1725_s17  ;;  %s2231_s10 = smov %s1548_s11 }
 0x5dc   : > { %s2232_s11 = smov %s1552_s12  ;;  %s2233_s12 = smov %s1722_s19 }
 0x5dd   :  { %22 = sbr.rel (!%p20_p2) target bundleno = 10 (0xa), region = 95 }
 0x5e4   :  { %1105 = vsyncpa [#allocation6], 1 }
 0x5e5   :  { %1107 = vsyncpa [#allocation6 + $0x1], 1 }
 0x5e6   :  { %1108 = vsyncpa [#allocation7], 1 }
 0x5e7   :  { %1110 = vsyncpa [#allocation7 + $0x1], 1 }

// kernel: tpu_custom_call.1
= control target key start
LH: loop header
LB: loop body
LE: loop exit
PB: predicated region body
PF: predicated region fallthrough
CT: control target
= control target key end

     0   :  { %s2224_s0 = inlined_call_operand.hbm [shape: f32[2,32,256], index: 0, kind: input, shape index: {}]   ;;  %s2225_s1 = inlined_call_operand.vmem [shape: bf16[16,32], index: 1, kind: input, shape index: {}]   ;;  %s2226_s2 = inlined_call_operand.vmem [shape: f32[16,1], index: 2, kind: input, shape index: {}]   ;;  %s2227_s3 = inlined_call_operand.vmem [shape: bf16[16,32], index: 3, kind: input, shape index: {}]   ;;  %s2228_s4 = inlined_call_operand.vmem [shape: f32[16,1], index: 4, kind: input, shape index: {}]   ;;  %s2229_s5 = inlined_call_operand.vmem [shape: bf16[32,32], index: 5, kind: input, shape index: {}]   ;;  %s2230_s6 = inlined_call_operand.vmem [shape: f32[32,1], index: 6, kind: input, shape index: {}]   ;;  %s2231_s7 = inlined_call_operand.<no memory space> [shape: f32[1], index: 7, kind: input, shape index: {}]   ;;  %s2232_s8 = inlined_call_operand.hbm [shape: f32[2,32,256], index: 8, kind: output, shape index: {}]  }
   0x1   :  { %2240 = sst [smem:[#allocation15_spill]] %s2232_s8 }
   0x2   :  { %13 = sst [smem:[#allocation4]] %s2231_s7 }
   0x3   :  { %14 = vsyncpa [#allocation6], 0 }
   0x4   :  { %16 = vsyncpa [#allocation6 + $0x1], 0 }
   0x5   :  { %17 = vsyncpa [#allocation7], 0 }
   0x6   :  { %19 = vsyncpa [#allocation7 + $0x1], 0  ;;  %s1662_s29 = smov 0   ;;  %s1664_s30 = smov 0  }
   0x7   :  { %s1666_s9 = smov 0   ;;  %s1668_s10 = smov 0  }
   0x8   :  { %s1670_s11 = smov 0   ;;  %s1672_s12 = smov 0  }
   0x9   :  { %s1674_s13 = smov 0   ;;  %s1676_s14 = smov 0  }
   0xa   :  { %s1678_s7 = smov 0   ;;  %s1680_s15 = smov 0  }
   0xb   :  { %s1682_s16 = smov 0  }
   0xc LB: > { %2241 = sst [smem:[#allocation11_spill]] %s1593_s7  ;;  %s1189_s17 = sadd.s32 4294967295, %s1601_s16   ;;  %s1601_s16 = sphi %s1682_s16, %s25_s16   ;;  %s1597_s15 = sphi %s1680_s15, %s2259_s15   ;;  %s1593_s7 = sphi %s1678_s7, %s2258_s7   ;;  %s1589_s14 = sphi %s1676_s14, %s2257_s14   ;;  %s1585_s13 = sphi %s1674_s13, %s2256_s13   ;;  %s1581_s12 = sphi %s1672_s12, %s2265_s12   ;;  %s1577_s11 = sphi %s1670_s11, %s2264_s11   ;;  %s1573_s10 = sphi %s1668_s10, %s2263_s10   ;;  %s1569_s9 = sphi %s1666_s9, %s2262_s9   ;;  %s1565_s30 = sphi %s1664_s30, %s2261_s30   ;;  %s1561_s29 = sphi %s1662_s29, %s2260_s29  }
   0xd   : > { %2242 = sst [smem:[#allocation12_spill]] %s1597_s15  ;;  %s1190_s18 = sadd.s32 4294967294, %s1601_s16  }
   0xe   : > { %s34_s19 = sadd.s32 1, %s1593_s7  ;;  %s37_s20 = sadd.s32 1, %s1597_s15 }
   0xf   : > { %p35_p0 = scmp.ge.s32.totalorder %s34_s19, 2  ;;  %s44_s21 = sadd.s32 1, %s1581_s12 }
  0x10   : > { %p51_p1 = scmp.ne.s32.totalorder %s1581_s12, %s1577_s11  ;;  %p52_p2 = scmp.eq.s32.totalorder %s1601_s16, 0 }
  0x11   : > { %s2267_s19 = smov (%p35_p0, %s34_s19), 0  ;;  %s2269_s20 = smov (!%p35_p0, %s37_s20), %s1597_s15 }
  0x12   : > { %2243 = sst [smem:[#allocation13_spill]] %s2267_s19  ;;  %p1726_p3 = por %p52_p2, %p51_p1 }
  0x13   : > { %p57_p4 = scmp.ne.s32.totalorder %s1577_s11, %s1573_s10  ;;  %p39_p5 = scmp.ge.s32.totalorder %s2269_s20, 2 }
  0x14   : > { %p58_p6 = scmp.eq.s32.totalorder %s1189_s17, 0  ;;  %s215_s23 = ssub.s32 %s1593_s7, %s2267_s19 }
  0x15   : > { %s219_s24 = sadd.s32 1, %s1569_s9  ;;  %s2271_s20 = smov (%p39_p5, %s2269_s20), 0 }
  0x16   : > { %2245 = sst [smem:[#allocation14_spill]] %s2271_s20  ;;  %p1736_p7 = por %p58_p6, %p57_p4 }
  0x17   : > { %p229_p8 = scmp.ne.s32.totalorder %s1569_s9, %s1565_s30  ;;  %s41_s26 = ssub.s32 %s1597_s15, %s2271_s20 }
  0x18   : > { %p230_p9 = scmp.eq.s32.totalorder %s1189_s17, 3  ;;  %p42_p10 = scmp.eq.s32.totalorder %s41_s26, 0 }
  0x19   : > { %s216_s27 = sor.u32 %s215_s23, %s41_s26  ;;  %p235_p13 = scmp.ne.s32.totalorder %s1565_s30, %s1561_s29 }
  0x1a   : > { %p217_p11 = scmp.eq.s32.totalorder %s216_s27, 0  ;;  %p1744_p12 = por %p230_p9, %p229_p8 }
  0x1b   : > { %s1749_s10 = scalar_select %p42_p10, %s1581_s12, %s44_s21  }
  0x1c   : > { %s2247_s28 = scalar_select %p1744_p12, 1, 0 }
  0x1d   : > { %s1752_s19 = scalar_select %p217_p11, %s1569_s9, %s219_s24  }
  0x1e   : > { %p236_p0 = scmp.eq.s32.totalorder %s1190_s18, 3  ;;  %p1247_p1 = scmp.lt.s32.totalorder %s1601_s16, 4 }
  0x1f   : > { %s277_s17 = sand.u32 1, %s1581_s12   ;;  %s1223_s26 = sshll.u32 %s1597_s15, 10 }
  0x20   : > { %p1757_p2 = por %p236_p0, %p235_p13  ;;  %s1193_s23 = sshll.u32 %s277_s17, 6 }
  0x21   : > { %s1766_s8 = scalar_lea.hbm %s2224_s0, %s1223_s26  ;;  %s281_s21 = scalar_lea.vmem [#allocation5], %s1193_s23 }
  0x22   : > { %s2248_s7 = scalar_select %p1757_p2, 1, 0 }
  0x23   : > { %s288_s24 = sshll.u32 %s281_s21, 4  ;;  %p1772_p4 = pnand %p1247_p1, %p1726_p3  ;;  %s1768_s24 = int_to_ptr.vmem [resolvable:$true] %s288_s24 }
  0x24   : > { %s1777_s15 = scalar_lea.sflag [#allocation6], %s277_s17  ;;  %s1449_s20 = scalar_lea.hbm %s1766_s8, 1024 }
  0x25   : > { %p1450_p6 = scmp.ne.s32.totalorder %s1766_s8, %s1449_s20  ;;  %p1451_p8 = pneg %p1772_p4 }
  0x26   : > { %s1454_s22 = scalar_lea.hbm %s2224_s0, 2048  ;;  %p1455_p3 = scmp.lt.u32.totalorder %s1766_s8, %s2224_s0 }
  0x27   : > { %p1452_p9 = pnand %p1451_p8, %p1450_p6  ;;  %p1456_p11 = scmp.lt.u32.totalorder %s1454_s22, %s1449_s20 }
  0x28   : > { %p1458_p0 = scmp.lt.u32.totalorder %s1449_s20, %s1766_s8 }
  0x29   : > { %p1453_p10 = pneg %p1452_p9  ;;  %p1457_p13 = por %p1456_p11, %p1455_p3 }
  0x2b   : > { %p1459_p1 = por %p1458_p0, %p1457_p13 }
  0x2d   : > { %p1460_p5 = pnand %p1459_p1, %p1453_p10 }
  0x2f   : > { %1463 = shalt.err (!%p1460_p5)
}
  0x30   : > { %s1464_s17 = scalar_lea.vmem %s1768_s24, 1024  ;;  %s1603_s23 = smov [#allocation5]  }
  0x31   : > { %p1465_p6 = scmp.ne.s32.totalorder %s1768_s24, %s1464_s17  ;;  %s1469_s26 = sshll.u32 %s1603_s23, 4  ;;  %s1470_s26 = int_to_ptr.vmem [resolvable:$false] %s1469_s26 }
  0x32   : > { %s1471_s27 = scalar_lea.vmem %s1470_s26, 2048  ;;  %p1472_p12 = scmp.lt.s32.totalorder %s1768_s24, %s1470_s26 }
  0x33   : > { %p1467_p9 = pnand %p1465_p6, %p1451_p8  ;;  %p1473_p3 = scmp.lt.s32.totalorder %s1471_s27, %s1464_s17 }
  0x35   : > { %p1468_p2 = pneg %p1467_p9  ;;  %p1474_p11 = por %p1473_p3, %p1472_p12 }
  0x37   : > { %p1475_p13 = pnand %p1474_p11, %p1468_p2 }
  0x39   : > { %1478 = shalt.err (!%p1475_p13)
}
  0x3a   : > { %s1604_s20 = smov 256   ;;  %s1605_s22 = smov 16  }
  0x3b   : > { %1242 = dma.hbm_to_vmem [thread:$0]  (!%p1772_p4), %s1766_s8, 1024, %s1768_s24, %s1777_s15, %s1604_s20, %s1604_s20, %s1605_s22  }
  0x3c   : > { %p296_p5 = scmp.lt.s32.totalorder %s1601_s16, 5  ;;  %p2250_p8 = scmp.ge.s32.totalorder %s1601_s16, 1 }
  0x3e   : > { %p297_p10 = pnand %p2250_p8, %p296_p5 }
  0x3f   : > { %s302_s21 = sand.u32 (!%p297_p10), 1, %s1577_s11  }
  0x40   : > { %300 = sbr.rel (%p297_p10) target bundleno = 1489 (0x5d1), region = 52  ;;  %s1197_s17 = sshll.u32 (!%p297_p10), %s302_s21, 6 }
  0x41   : > { %s303_s23 = scalar_lea.sflag (!%p297_p10), [#allocation6], %s302_s21  ;;  %s1809_s26 = scalar_lea.vmem (!%p297_p10), [#allocation5], %s1197_s17 }
  0x47   : > { %1552 = dma.done.wait (%p1736_p7), %s303_s23, 1024  }
  0x48   : > { %1554 = vsyncadd (%p1736_p7), %s303_s23, 4294966272  ;;  %s2239_s18 = sand.u32 1, %s1565_s30   ;;  %p1199_p12 = scmp.ne.s32.totalorder %s1585_s13, 0 }
  0x49   : > { %s1198_s8 = sshll.u32 %s2239_s18, 5  ;;  %v345_v0 = vld [vmem:[%s1809_s26 + $0x8] sm:$0xff] (!%p1199_p12)  ;;  %v347_v1 = vld [vmem:[%s1809_s26 + $0x18] sm:$0xff] (!%p1199_p12)  ;;  %v344_v2 = vld [vmem:[%s1809_s26] sm:$0xff] (!%p1199_p12)  ;;  %v1606_v7 = vmov (!%p1199_p12), 0   ;;  %vm375_vm0 = vcmask (!%p1199_p12), 261120  }
  0x4a   : > { %s1818_s15 = scalar_lea.vmem [#allocation8], %s1198_s8  ;;  %343 = sbr.rel (%p1199_p12) target bundleno = 312 (0x138), region = 60  ;;  %v353_v3 = vpack.c.bf16 (!%p1199_p12), %v347_v1, %v345_v0  ;;  %v346_v4 = vld [vmem:[%s1809_s26 + $0x10] sm:$0xff] (!%p1199_p12)  ;;  %v349_v5 = vld [vmem:[%s1809_s26 + $0x28] sm:$0xff] (!%p1199_p12)  ;;  %v351_v6 = vld [vmem:[%s1809_s26 + $0x38] sm:$0xff] (!%p1199_p12)  ;;  %411 = vmatprep.mubr.bf16.mxu0 (!%p1199_p12), %v1606_v7  ;;  %502 = vmatprep.mubr.bf16.mxu1 (!%p1199_p12), %v1606_v7 }
  0x4b   : > { %v352_v8 = vpack.c.bf16 (!%p1199_p12), %v346_v4, %v344_v2  ;;  %v355_v9 = vpack.c.bf16 (!%p1199_p12), %v351_v6, %v349_v5  ;;  %v348_v10 = vld [vmem:[%s1809_s26 + $0x20] sm:$0xff] (!%p1199_p12)  ;;  %v350_v11 = vld [vmem:[%s1809_s26 + $0x30] sm:$0xff] (!%p1199_p12)  ;;  %1347 = vset.pattern.permute.xlu1 (!%p1199_p12), %v1606_v7  ;;  %1346 = vset.pattern.permute.xlu0 (!%p1199_p12), %v1606_v7  ;;  %v431_v17 = vld [vmem:[%s2230_s6 + $0x8] sm:$0xff] (!%p1199_p12) }
  0x4c   : > { %379 = vmatprep.subr.bf16.mxu0 (!%p1199_p12), %v353_v3  ;;  %470 = vmatprep.subr.bf16.mxu1 (!%p1199_p12), %v353_v3  ;;  %v354_v12 = vpack.c.bf16 (!%p1199_p12), %v350_v11, %v348_v10  ;;  %v430_v13 = vld [vmem:[%s2230_s6] sm:$0xff] (!%p1199_p12)  ;;  %v359_v18 = vld [vmem:[%s2228_s4 + $0x8] sm:$0xff] (!%p1199_p12)  ;;  %v433_v19 = vld [vmem:[%s2230_s6 + $0x18] sm:$0xff] (!%p1199_p12) }
  0x4d   : > { %380 = vmatpush1.bf16.msra.mxu0 (!%p1199_p12), %v352_v8  ;;  %471 = vmatpush1.bf16.msra.mxu1 (!%p1199_p12), %v352_v8  ;;  %v358_v14 = vld [vmem:[%s2228_s4] sm:$0xff] (!%p1199_p12)  ;;  %v432_v20 = vld [vmem:[%s2230_s6 + $0x10] sm:$0xff] (!%p1199_p12)  ;;  %v1350_v21 = vld [vmem:[%s2229_s5 + $0x8] sm:$0xff] (!%p1199_p12)  }
  0x4e   : > { %381 = vmatprep.subr.bf16.mxu0 (!%p1199_p12), %v355_v9  ;;  %472 = vmatprep.subr.bf16.mxu1 (!%p1199_p12), %v355_v9  ;;  %v1348_v15 = vld [vmem:[%s2227_s3] sm:$0xff] (!%p1199_p12)  }
  0x4f   : > { %436 = vperm.xlu1 (!%p1199_p12), %1347, %v430_v13   ;;  %v1349_v16 = vld [vmem:[%s2229_s5] sm:$0xff] (!%p1199_p12)   ;;  %362 = vperm.xlu0 (!%p1199_p12), %1346, %v358_v14  }
  0x51   : > { %382 = vmatpush1.bf16.msra.mxu0 %v354_v12  ;;  %473 = vmatpush1.bf16.msra.mxu1 %v354_v12 }
  0x53   : > { %441 = vperm.xlu1 %1347, %v431_v17   ;;  %367 = vperm.xlu0 %1346, %v359_v18  }
  0x54   : > { %1201 = vmatmul.mubr.msk.bf16.vlgmr.msra.gmra.mrb[0].mxu0 %vm375_vm0, %v1348_v15  ;;  %1204 = vmatmul.mubr.msk.bf16.vlgmr.msra.gmra.mrb[0].mxu1 %vm375_vm0, %v1349_v16 }
  0x55   : > { %512 = vmatprep.mubr.bf16.mxu1 %v1606_v7 }
  0x57   : > { %451 = vperm.xlu1 %1347, %v433_v19   ;;  %446 = vperm.xlu0 %1346, %v432_v20  }
  0x5c   : > { %1205 = vmatmul.mubr.msk.bf16.gmra.mrb[4].mxu1 %vm375_vm0, %v1350_v21 }
  0xce   : > { %v437_v22 = vpop.permute.xlu1 %436  ;;  %v363_v23 = vpop.permute.xlu0 %362 }
  0xd2   : > { %v442_v24 = vpop.permute.xlu1 %441  ;;  %v368_v25 = vpop.permute.xlu0 %367 }
  0xd6   : > { %v452_v47 = vpop.permute.xlu1 %451  ;;  %v447_v49 = vpop.permute.xlu0 %446 }
 0x127   : > { %v413_v26 = vpop.f32.mrb[0].mxu0  ;;  %v504_v27 = vpop.f32.mrb[0].mxu1 }
 0x128   : > { %v414_v28 = vadd.f32 %v413_v26, %v363_v23  ;;  %v415_v29 = vpop.f32.mrb[1].mxu0  ;;  %v506_v30 = vpop.f32.mrb[1].mxu1  ;;  %v505_v34 = vadd.f32 %v504_v27, %v437_v22 }
 0x129   : > { %v416_v31 = vadd.f32 %v415_v29, %v363_v23  ;;  %v417_v32 = vpop.f32.mrb[2].mxu0  ;;  %v508_v33 = vpop.f32.mrb[2].mxu1  ;;  %v507_v39 = vadd.f32 %v506_v30, %v437_v22 }
 0x12a   : > { %v418_v35 = vadd.f32 %v417_v32, %v368_v25  ;;  %v509_v36 = vadd.f32 %v508_v33, %v442_v24  ;;  %v419_v37 = vpop.f32.mrb[3].mxu0  ;;  %v510_v38 = vpop.f32.mrb[3].mxu1 }
 0x12b   : > { %v420_v40 = vadd.f32 %v419_v37, %v368_v25  ;;  %v511_v41 = vadd.f32 %v510_v38, %v442_v24 }
 0x12c   : > { %v422_v42 = vpack.c.bf16 %v418_v35, %v414_v28  ;;  %v523_v43 = vpack.c.bf16 %v509_v36, %v505_v34 }
 0x12d   : > { %v423_v44 = vpack.c.bf16 %v420_v40, %v416_v31  ;;  %v524_v45 = vpack.c.bf16 %v511_v41, %v507_v39 }
 0x12e   : > { %424 = vst [vmem:[#allocation2] sm:$0xff] %v422_v42  ;;  %527 = vst [vmem:[#allocation3] sm:$0xff] %v523_v43 }
 0x12f   : > { %425 = vst [vmem:[#allocation2 + $0x8] sm:$0xff] %v423_v44  ;;  %528 = vst [vmem:[#allocation3 + $0x8] sm:$0xff] %v524_v45  ;;  %v514_v46 = vpop.f32.mrb[4].mxu1 }
 0x130   : > { %v516_v48 = vpop.f32.mrb[5].mxu1  ;;  %v515_v51 = vadd.f32 %v514_v46, %v447_v49 }
 0x131   : > { %v518_v50 = vpop.f32.mrb[6].mxu1  ;;  %v517_v54 = vadd.f32 %v516_v48, %v447_v49 }
 0x132   : > { %v519_v52 = vadd.f32 %v518_v50, %v452_v47  ;;  %v520_v53 = vpop.f32.mrb[7].mxu1 }
 0x133   : > { %v521_v55 = vadd.f32 %v520_v53, %v452_v47 }
 0x134   : > { %v525_v56 = vpack.c.bf16 %v519_v52, %v515_v51 }
 0x135   : > { %v526_v57 = vpack.c.bf16 %v521_v55, %v517_v54 }
 0x136   : > { %529 = vst [vmem:[#allocation3 + $0x10] sm:$0xff] %v525_v56 }
 0x137   : > { %530 = vst [vmem:[#allocation3 + $0x18] sm:$0xff] %v526_v57 }
 0x138 PF: > { %s1206_s23 = sshll.u32 %s1585_s13, 7  ;;  %v1607_v58 = vmov 0.0   ;;  %vm1608_vm1 = vmmov 0   ;;  %v544_v59 = vld [vmem:[%s2226_s2] sm:$0xff]  ;;  %v1609_v60 = vmov 0   ;;  %v545_v61 = vld [vmem:[%s2226_s2 + $0x8] sm:$0xff] }
 0x139   : > { %1227 = vmatprep.subr.bf16.mxu0 %v1607_v58  ;;  %s532_s8 = sshra.s32 %s1206_s23, 7  ;;  %1231 = vmatprep.mubr.msk.bf16.mxu0 %vm1608_vm1, %v1607_v58  ;;  %v1352_v4 = vld [vmem:[%s2225_s1] sm:$0xff]   ;;  %vm561_vm2 = vcmask 261120   ;;  %v608_v5 = vld [vmem:[#allocation2 + $0x8] sm:$0xff]  ;;  %vm625_vm3 = vcmask 130048   ;;  %s1072_s17 = sld [smem:[#allocation4]] }
 0x13a   : > { %s1207_s27 = sshll.u32 %s532_s8, 3  ;;  %1351 = vset.pattern.permute.xlu0 %v1609_v60  ;;  %v607_v6 = vld [vmem:[#allocation2] sm:$0xff]  ;;  %s1219_s23 = sshll.u32 %s1589_s14, 3 }
 0x13b   : > { %s535_s20 = scalar_lea.vmem %s1809_s26, %s1207_s27 [#allocation5]  ;;  %548 = vperm.xlu0 %1351, %v544_v59   ;;  %s1098_s8 = sadd.s32 %s1585_s13, %s1219_s23 }
 0x13c   : > { %v1864_v62 = vld [vmem:[%s535_s20] sm:$0xff]  ;;  %v1866_v63 = vld [vmem:[%s535_s20 + $0x10] sm:$0xff]  ;;  %s1220_s25 = sshll.u32 %s1098_s8, 7  ;;  %s1101_s24 = sshll.u32 %s1818_s15, 4  ;;  %s2156_s24 = int_to_ptr.vmem [resolvable:$true] %s1101_s24 }
 0x13d   : > { %v1868_v0 = vld [vmem:[%s535_s20 + $0x20] sm:$0xff]  ;;  %v540_v1 = vpack.c.bf16 %v1866_v63, %v1864_v62  ;;  %v1872_v2 = vld [vmem:[%s535_s20 + $0x30] sm:$0xff]  ;;  %s2251_s20 = sld [smem:[#allocation15_spill]]  ;;  %s2252_s13 = sand.u32 1, %s1565_s30  }
 0x13e   : > { %v541_v3 = vpack.c.bf16 %v1872_v2, %v1868_v0  ;;  %s2163_s21 = scalar_lea.sflag [#allocation7], %s2252_s13  ;;  %s1479_s26 = scalar_lea.vmem %s2156_s24, 512 }
 0x13f   : > { %1228 = vmatpush3.bf16.msra.mxu0 %v540_v1  ;;  %553 = vperm.xlu0 %1351, %v545_v61   ;;  %p1480_p7 = scmp.ne.s32.totalorder %s2156_s24, %s1479_s26  ;;  %p2253_p2 = scmp.ne.s32.totalorder %s2247_s28, 0 }
 0x140   : > { %1229 = vmatprep.subr.bf16.mxu0 %v1607_v58  ;;  %s1610_s18 = smov [#allocation8]  }
 0x141   : > { %p1481_p4 = pnand %p1480_p7, %p2253_p2 }
 0x143   : > { %1230 = vmatpush3.bf16.msra.mxu0 %v541_v3  ;;  %s2154_s22 = scalar_lea.hbm %s2251_s20, %s1220_s25  ;;  %p1482_p0 = pneg %p1481_p4 }
 0x144   : > { %650 = vmatprep.subr.bf16.mxu0 %v608_v5 }
 0x146   : > { %1232 = vmatmul.mubr.msk.bf16.vlgmr.msra.gmra.mrb[0].mxu0 %vm561_vm2, %v1352_v4 }
 0x147   : > { %682 = vmatprep.mubr.bf16.mxu0 %v1609_v60  ;;  %651 = vmatpush1.bf16.msra.mxu0 %v607_v6 }
 0x1ba   : > { %v549_v7 = vpop.permute.xlu0 %548 }
 0x1be   : > { %v554_v10 = vpop.permute.xlu0 %553 }
 0x219   : > { %v599_v8 = vpop.f32.mrb[0].mxu0 }
 0x21a   : > { %v1233_v9 = vpop.f32.mrb[1].mxu0  ;;  %v600_v12 = vadd.f32 %v599_v8, %v549_v7 }
 0x21b   : > { %v602_v11 = vpop.f32.mrb[2].mxu0 }
 0x21c   : > { %v603_v13 = vadd.f32 %v602_v11, %v554_v10  ;;  %v1234_v14 = vpop.f32.mrb[3].mxu0 }
 0x21e   : > { %v606_v15 = vpack.c.bf16 %v603_v13, %v600_v12 }
 0x220   : > { %609 = vxpose.xlu1.c.b16.start.end [1/1] (short) %v606_v15, 128 }
 0x286   : > { %v617_v16 = vpop.trf.xlu1 }
 0x287   : > { %1210 = vmatmul.mubr.msk.bf16.vlgmr.msra.gmra.mrb[4].mxu0 %vm625_vm3, %v617_v16 }
 0x288   : > { %692 = vmatprep.mubr.bf16.mxu0 %v1609_v60 }
 0x28a   : > { %v618_v17 = vpop.trf.xlu1 }
 0x28e   : > { %v619_v18 = vpop.trf.xlu1 }
 0x28f   : > { %1211 = vmatmul.mubr.msk.bf16.gmra.mrb[8].mxu0 %vm625_vm3, %v618_v17 }
 0x290   : > { %702 = vmatprep.mubr.bf16.mxu0 %v1609_v60 }
 0x292   : > { %v620_v19 = vpop.trf.xlu1 }
 0x296   : > { %v621_v20 = vpop.trf.xlu1 }
 0x297   : > { %1212 = vmatmul.mubr.msk.bf16.gmra.mrb[12].mxu0 %vm625_vm3, %v619_v18 }
 0x298   : > { %712 = vmatprep.mubr.bf16.mxu0 %v1609_v60 }
 0x29a   : > { %v622_v21 = vpop.trf.xlu1 }
 0x29e   : > { %v623_v22 = vpop.trf.xlu1 }
 0x29f   : > { %1213 = vmatmul.mubr.msk.bf16.gmra.mrb[16].mxu0 %vm625_vm3, %v620_v19 }
 0x2a0   : > { %722 = vmatprep.mubr.bf16.mxu0 %v1609_v60 }
 0x2a2   : > { %v624_v23 = vpop.trf.xlu1 }
 0x2a7   : > { %1214 = vmatmul.mubr.msk.bf16.gmra.mrb[20].mxu0 %vm625_vm3, %v621_v20 }
 0x2a8   : > { %732 = vmatprep.mubr.bf16.mxu0 %v1609_v60 }
 0x2af   : > { %1215 = vmatmul.mubr.msk.bf16.gmra.mrb[24].mxu0 %vm625_vm3, %v622_v21 }
 0x2b0   : > { %742 = vmatprep.mubr.bf16.mxu0 %v1609_v60 }
 0x2b7   : > { %1216 = vmatmul.mubr.msk.bf16.gmra.mrb[28].mxu0 %vm625_vm3, %v623_v22 }
 0x2b8   : > { %752 = vmatprep.mubr.bf16.mxu0 %v1609_v60 }
 0x2bf   : > { %1217 = vmatmul.mubr.msk.bf16.gmra.mrb[32].mxu0 %vm625_vm3, %v624_v23 }
 0x35a   : > { %v1887_v24 = vpop.f32.mrb[4].mxu0 }
 0x35b   : > { %v1889_v25 = vpop.f32.mrb[5].mxu0 }
 0x35c   : > { %v1891_v26 = vpop.f32.mrb[6].mxu0  ;;  %v763_v27 = vmax.f32 %v1887_v24, %v1889_v25 }
 0x35d   : > { %v1895_v28 = vpop.f32.mrb[7].mxu0 }
 0x35e   : > { %764 = vmax.xlane.f32.xlu1 %v763_v27  ;;  %v766_v29 = vmax.f32 %v1891_v26, %v1895_v28 }
 0x360   : > { %767 = vmax.xlane.f32.xlu0 %v766_v29 }
 0x362   : > { %v1899_v30 = vpop.f32.mrb[8].mxu0 }
 0x363   : > { %v1901_v31 = vpop.f32.mrb[9].mxu0 }
 0x364   : > { %v1903_v32 = vpop.f32.mrb[10].mxu0  ;;  %v769_v33 = vmax.f32 %v1899_v30, %v1901_v31 }
 0x365   : > { %v1907_v34 = vpop.f32.mrb[11].mxu0 }
 0x366   : > { %770 = vmax.xlane.f32.xlu0 %v769_v33  ;;  %v772_v35 = vmax.f32 %v1903_v32, %v1907_v34 }
 0x36a   : > { %773 = vmax.xlane.f32.xlu0 %v772_v35  ;;  %v1911_v36 = vpop.f32.mrb[12].mxu0 }
 0x36b   : > { %v1913_v37 = vpop.f32.mrb[13].mxu0 }
 0x36c   : > { %v1915_v38 = vpop.f32.mrb[14].mxu0  ;;  %v775_v39 = vmax.f32 %v1911_v36, %v1913_v37 }
 0x36d   : > { %v1919_v40 = vpop.f32.mrb[15].mxu0 }
 0x36e   : > { %776 = vmax.xlane.f32.xlu1 %v775_v39  ;;  %v778_v41 = vmax.f32 %v1915_v38, %v1919_v40 }
 0x370   : > { %779 = vmax.xlane.f32.xlu0 %v778_v41 }
 0x372   : > { %v1923_v42 = vpop.f32.mrb[16].mxu0 }
 0x373   : > { %v1925_v43 = vpop.f32.mrb[17].mxu0 }
 0x374   : > { %v1927_v44 = vpop.f32.mrb[18].mxu0  ;;  %v781_v45 = vmax.f32 %v1923_v42, %v1925_v43 }
 0x375   : > { %v1931_v46 = vpop.f32.mrb[19].mxu0 }
 0x376   : > { %782 = vmax.xlane.f32.xlu1 %v781_v45  ;;  %v784_v47 = vmax.f32 %v1927_v44, %v1931_v46 }
 0x378   : > { %785 = vmax.xlane.f32.xlu0 %v784_v47 }
 0x37a   : > { %v1935_v48 = vpop.f32.mrb[20].mxu0 }
 0x37b   : > { %v1937_v49 = vpop.f32.mrb[21].mxu0 }
 0x37c   : > { %v1939_v50 = vpop.f32.mrb[22].mxu0  ;;  %v787_v51 = vmax.f32 %v1935_v48, %v1937_v49 }
 0x37d   : > { %v1943_v52 = vpop.f32.mrb[23].mxu0 }
 0x37e   : > { %788 = vmax.xlane.f32.xlu1 %v787_v51  ;;  %v790_v53 = vmax.f32 %v1939_v50, %v1943_v52 }
 0x380   : > { %791 = vmax.xlane.f32.xlu0 %v790_v53 }
 0x382   : > { %v1947_v54 = vpop.f32.mrb[24].mxu0 }
 0x383   : > { %v1949_v55 = vpop.f32.mrb[25].mxu0 }
 0x384   : > { %v1951_v56 = vpop.f32.mrb[26].mxu0  ;;  %v793_v57 = vmax.f32 %v1947_v54, %v1949_v55 }
 0x385   : > { %v1955_v58 = vpop.f32.mrb[27].mxu0 }
 0x386   : > { %794 = vmax.xlane.f32.xlu1 %v793_v57  ;;  %v796_v59 = vmax.f32 %v1951_v56, %v1955_v58 }
 0x388   : > { %797 = vmax.xlane.f32.xlu0 %v796_v59 }
 0x38a   : > { %v1959_v60 = vpop.f32.mrb[28].mxu0 }
 0x38b   : > { %v1961_v61 = vpop.f32.mrb[29].mxu0 }
 0x38c   : > { %v1963_v1 = vpop.f32.mrb[30].mxu0  ;;  %v799_v3 = vmax.f32 %v1959_v60, %v1961_v61 }
 0x38d   : > { %v1967_v4 = vpop.f32.mrb[31].mxu0 }
 0x38e   : > { %800 = vmax.xlane.f32.xlu1 %v799_v3  ;;  %v802_v5 = vmax.f32 %v1963_v1, %v1967_v4 }
 0x390   : > { %803 = vmax.xlane.f32.xlu0 %v802_v5 }
 0x392   : > { %v1971_v6 = vpop.f32.mrb[32].mxu0 }
 0x393   : > { %v1973_v7 = vpop.f32.mrb[33].mxu0 }
 0x394   : > { %v1975_v8 = vpop.f32.mrb[34].mxu0  ;;  %v805_v9 = vmax.f32 %v1971_v6, %v1973_v7 }
 0x395   : > { %v1979_v10 = vpop.f32.mrb[35].mxu0 }
 0x396   : > { %v808_v11 = vmax.f32 %v1975_v8, %v1979_v10  ;;  %806 = vmax.xlane.f32.xlu1 %v805_v9 }
 0x398   : > { %809 = vmax.xlane.f32.xlu0 %v808_v11 }
 0x3eb   : > { %v765_v12 = vpop.xlane.xlu1 %764 }
 0x3ec   : > { %v811_v13 = vsub.f32 %v1887_v24, %v765_v12  ;;  %v812_v14 = vsub.f32 %v1889_v25, %v765_v12 }
 0x3ed   : > { %v768_v15 = vpop.xlane.xlu0 %767 }
 0x3ee   : > { %v843_v16 = vmul.f32 1.442695, %v811_v13  ;;  %v845_v17 = vmul.f32 1.442695, %v812_v14  ;;  %v813_v18 = vsub.f32 %v1891_v26, %v768_v15  ;;  %v814_v19 = vsub.f32 %v1895_v28, %v768_v15 }
 0x3f0   : > { %1353 = vpow2.f32 %v843_v16  ;;  %v847_v20 = vmul.f32 1.442695, %v813_v18  ;;  %v849_v21 = vmul.f32 1.442695, %v814_v19 }
 0x3f1   : > { %1355 = vpow2.f32 %v845_v17 }
 0x3f2   : > { %1357 = vpow2.f32 %v847_v20 }
 0x3f3   : > { %1359 = vpow2.f32 %v849_v21  ;;  %v771_v22 = vpop.xlane.xlu0 %770 }
 0x3f4   : > { %v815_v23 = vsub.f32 %v1899_v30, %v771_v22  ;;  %v816_v24 = vsub.f32 %v1901_v31, %v771_v22 }
 0x3f6   : > { %v851_v27 = vmul.f32 1.442695, %v815_v23  ;;  %v853_v25 = vmul.f32 1.442695, %v816_v24 }
 0x3f7   : > { %v774_v29 = vpop.xlane.xlu0 %773 }
 0x3f8   : > { %1361 = vpow2.f32 %v851_v27  ;;  %v817_v33 = vsub.f32 %v1903_v32, %v774_v29  ;;  %v818_v26 = vsub.f32 %v1907_v34, %v774_v29 }
 0x3f9   : > { %1363 = vpow2.f32 %v853_v25 }
 0x3fa   : > { %v1991_v28 = vpop.eup %1353  ;;  %v855_v35 = vmul.f32 1.442695, %v817_v33  ;;  %v857_v39 = vmul.f32 1.442695, %v818_v26 }
 0x3fb   : > { %v1993_v41 = vpop.eup %1355  ;;  %v777_v45 = vpop.xlane.xlu1 %776 }
 0x3fc   : > { %v1995_v47 = vpop.eup %1357  ;;  %1365 = vpow2.f32 %v855_v35  ;;  %v819_v30 = vsub.f32 %v1911_v36, %v777_v45  ;;  %v820_v31 = vsub.f32 %v1913_v37, %v777_v45  ;;  %v907_v32 = vadd.f32 %v1993_v41, %v1991_v28 }
 0x3fd   : > { %v2001_v51 = vpop.eup %1359  ;;  %1367 = vpow2.f32 %v857_v39  ;;  %v780_v34 = vpop.xlane.xlu0 %779 }
 0x3fe   : > { %v859_v53 = vmul.f32 1.442695, %v819_v30  ;;  %v861_v57 = vmul.f32 1.442695, %v820_v31  ;;  %v821_v59 = vsub.f32 %v1915_v38, %v780_v34  ;;  %v822_v3 = vsub.f32 %v1919_v40, %v780_v34  ;;  %908 = vadd.xlane.f32.xlu1 %v907_v32 }
 0x3ff   : > { %v910_v5 = vadd.f32 %v2001_v51, %v1995_v47 }
 0x400   : > { %1369 = vpow2.f32 %v859_v53  ;;  %v863_v36 = vmul.f32 1.442695, %v821_v59  ;;  %v865_v37 = vmul.f32 1.442695, %v822_v3 }
 0x401   : > { %1371 = vpow2.f32 %v861_v57  ;;  %911 = vadd.xlane.f32.xlu0 %v910_v5 }
 0x402   : > { %v2007_v9 = vpop.eup %1361  ;;  %1373 = vpow2.f32 %v863_v36 }
 0x403   : > { %v2009_v11 = vpop.eup %1363  ;;  %1375 = vpow2.f32 %v865_v37  ;;  %v783_v12 = vpop.xlane.xlu1 %782 }
 0x404   : > { %v823_v38 = vsub.f32 %v1923_v42, %v783_v12  ;;  %v824_v40 = vsub.f32 %v1925_v43, %v783_v12  ;;  %v913_v13 = vadd.f32 %v2009_v11, %v2007_v9 }
 0x405   : > { %v786_v14 = vpop.xlane.xlu0 %785 }
 0x406   : > { %v2015_v15 = vpop.eup %1365  ;;  %v867_v16 = vmul.f32 1.442695, %v823_v38  ;;  %v869_v17 = vmul.f32 1.442695, %v824_v40  ;;  %v825_v18 = vsub.f32 %v1927_v44, %v786_v14  ;;  %v826_v19 = vsub.f32 %v1931_v46, %v786_v14  ;;  %914 = vadd.xlane.f32.xlu1 %v913_v13 }
 0x407   : > { %v2019_v20 = vpop.eup %1367 }
 0x408   : > { %1377 = vpow2.f32 %v867_v16  ;;  %v871_v21 = vmul.f32 1.442695, %v825_v18  ;;  %v873_v42 = vmul.f32 1.442695, %v826_v19  ;;  %v916_v43 = vadd.f32 %v2019_v20, %v2015_v15 }
 0x409   : > { %1379 = vpow2.f32 %v869_v17 }
 0x40a   : > { %v2023_v22 = vpop.eup %1369  ;;  %1381 = vpow2.f32 %v871_v21  ;;  %917 = vadd.xlane.f32.xlu0 %v916_v43 }
 0x40b   : > { %v2025_v23 = vpop.eup %1371  ;;  %1383 = vpow2.f32 %v873_v42  ;;  %v789_v44 = vpop.xlane.xlu1 %788 }
 0x40c   : > { %v2027_v24 = vpop.eup %1373  ;;  %v827_v46 = vsub.f32 %v1935_v48, %v789_v44  ;;  %v828_v27 = vsub.f32 %v1937_v49, %v789_v44  ;;  %v919_v25 = vadd.f32 %v2025_v23, %v2023_v22 }
 0x40d   : > { %v2033_v29 = vpop.eup %1375  ;;  %v792_v33 = vpop.xlane.xlu0 %791 }
 0x40e   : > { %v875_v26 = vmul.f32 1.442695, %v827_v46  ;;  %v877_v35 = vmul.f32 1.442695, %v828_v27  ;;  %v829_v39 = vsub.f32 %v1939_v50, %v792_v33  ;;  %v830_v45 = vsub.f32 %v1943_v52, %v792_v33  ;;  %920 = vadd.xlane.f32.xlu1 %v919_v25 }
 0x40f   : > { %v922_v30 = vadd.f32 %v2033_v29, %v2027_v24 }
 0x410   : > { %1385 = vpow2.f32 %v875_v26  ;;  %v879_v48 = vmul.f32 1.442695, %v829_v39  ;;  %v881_v31 = vmul.f32 1.442695, %v830_v45 }
 0x411   : > { %1387 = vpow2.f32 %v877_v35  ;;  %923 = vadd.xlane.f32.xlu0 %v922_v30 }
 0x412   : > { %v2039_v49 = vpop.eup %1377  ;;  %1389 = vpow2.f32 %v879_v48 }
 0x413   : > { %v2041_v32 = vpop.eup %1379  ;;  %1391 = vpow2.f32 %v881_v31  ;;  %v795_v34 = vpop.xlane.xlu1 %794 }
 0x414   : > { %v2043_v53 = vpop.eup %1381  ;;  %v831_v50 = vsub.f32 %v1947_v54, %v795_v34  ;;  %v832_v52 = vsub.f32 %v1949_v55, %v795_v34  ;;  %v925_v57 = vadd.f32 %v2041_v32, %v2039_v49 }
 0x415   : > { %v2049_v59 = vpop.eup %1383  ;;  %v798_v3 = vpop.xlane.xlu0 %797 }
 0x416   : > { %v883_v5 = vmul.f32 1.442695, %v831_v50  ;;  %v885_v36 = vmul.f32 1.442695, %v832_v52  ;;  %v833_v37 = vsub.f32 %v1951_v56, %v798_v3  ;;  %v834_v12 = vsub.f32 %v1955_v58, %v798_v3  ;;  %926 = vadd.xlane.f32.xlu1 %v925_v57 }
 0x417   : > { %v928_v38 = vadd.f32 %v2049_v59, %v2043_v53 }
 0x418   : > { %1393 = vpow2.f32 %v883_v5  ;;  %v887_v54 = vmul.f32 1.442695, %v833_v37  ;;  %v889_v40 = vmul.f32 1.442695, %v834_v12 }
 0x419   : > { %1395 = vpow2.f32 %v885_v36  ;;  %929 = vadd.xlane.f32.xlu0 %v928_v38 }
 0x41a   : > { %v2055_v55 = vpop.eup %1385  ;;  %1397 = vpow2.f32 %v887_v54 }
 0x41b   : > { %v2057_v13 = vpop.eup %1387  ;;  %1399 = vpow2.f32 %v889_v40  ;;  %v801_v14 = vpop.xlane.xlu1 %800 }
 0x41c   : > { %v2059_v16 = vpop.eup %1389  ;;  %v835_v56 = vsub.f32 %v1959_v60, %v801_v14  ;;  %v836_v58 = vsub.f32 %v1961_v61, %v801_v14  ;;  %v931_v17 = vadd.f32 %v2057_v13, %v2055_v55  ;;  %v1020_v14 = vld [vmem:[#allocation3 + $0x8] sm:$0xff] }
 0x41d   : > { %v2065_v18 = vpop.eup %1391  ;;  %v804_v19 = vpop.xlane.xlu0 %803  ;;  %1055 = vmatprep.mubr.bf16.mxu1 %v1020_v14 }
 0x41e   : > { %v891_v21 = vmul.f32 1.442695, %v835_v56  ;;  %v893_v42 = vmul.f32 1.442695, %v836_v58  ;;  %v837_v43 = vsub.f32 %v1963_v1, %v804_v19  ;;  %v838_v44 = vsub.f32 %v1967_v4, %v804_v19  ;;  %932 = vadd.xlane.f32.xlu1 %v931_v17 }
 0x41f   : > { %v934_v46 = vadd.f32 %v2065_v18, %v2059_v16 }
 0x420   : > { %1401 = vpow2.f32 %v891_v21  ;;  %v895_v60 = vmul.f32 1.442695, %v837_v43  ;;  %v897_v27 = vmul.f32 1.442695, %v838_v44 }
 0x421   : > { %1403 = vpow2.f32 %v893_v42  ;;  %935 = vadd.xlane.f32.xlu0 %v934_v46 }
 0x422   : > { %v2071_v61 = vpop.eup %1393  ;;  %1405 = vpow2.f32 %v895_v60 }
 0x423   : > { %v2073_v25 = vpop.eup %1395  ;;  %1407 = vpow2.f32 %v897_v27  ;;  %v807_v33 = vpop.xlane.xlu1 %806 }
 0x424   : > { %v2075_v26 = vpop.eup %1397  ;;  %v839_v1 = vsub.f32 %v1971_v6, %v807_v33  ;;  %v840_v4 = vsub.f32 %v1973_v7, %v807_v33  ;;  %v937_v35 = vadd.f32 %v2073_v25, %v2071_v61 }
 0x425   : > { %v2081_v39 = vpop.eup %1399  ;;  %v810_v45 = vpop.xlane.xlu0 %809 }
 0x426   : > { %v899_v30 = vmul.f32 1.442695, %v839_v1  ;;  %v901_v48 = vmul.f32 1.442695, %v840_v4  ;;  %938 = vadd.xlane.f32.xlu1 %v937_v35  ;;  %v841_v31 = vsub.f32 %v1975_v8, %v810_v45  ;;  %v842_v34 = vsub.f32 %v1979_v10, %v810_v45 }
 0x427   : > { %v940_v50 = vadd.f32 %v2081_v39, %v2075_v26 }
 0x428   : > { %1409 = vpow2.f32 %v899_v30  ;;  %v903_v6 = vmul.f32 1.442695, %v841_v31  ;;  %v905_v52 = vmul.f32 1.442695, %v842_v34 }
 0x429   : > { %1411 = vpow2.f32 %v901_v48  ;;  %941 = vadd.xlane.f32.xlu0 %v940_v50 }
 0x42a   : > { %v2087_v7 = vpop.eup %1401  ;;  %1413 = vpow2.f32 %v903_v6 }
 0x42b   : > { %v2089_v57 = vpop.eup %1403  ;;  %1415 = vpow2.f32 %v905_v52 }
 0x42c   : > { %v2091_v3 = vpop.eup %1405  ;;  %v943_v8 = vadd.f32 %v2089_v57, %v2087_v7 }
 0x42d   : > { %v2095_v10 = vpop.eup %1407 }
 0x42e   : > { %944 = vadd.xlane.f32.xlu1 %v943_v8  ;;  %v946_v5 = vadd.f32 %v2095_v10, %v2091_v3 }
 0x430   : > { %947 = vadd.xlane.f32.xlu0 %v946_v5 }
 0x432   : > { %v2099_v36 = vpop.eup %1409 }
 0x433   : > { %v2101_v37 = vpop.eup %1411 }
 0x434   : > { %v2103_v12 = vpop.eup %1413  ;;  %v949_v38 = vadd.f32 %v2101_v37, %v2099_v36 }
 0x435   : > { %v2107_v54 = vpop.eup %1415 }
 0x436   : > { %950 = vadd.xlane.f32.xlu1 %v949_v38  ;;  %v952_v40 = vadd.f32 %v2107_v54, %v2103_v12 }
 0x438   : > { %953 = vadd.xlane.f32.xlu0 %v952_v40 }
 0x48b   : > { %v909_v56 = vpop.xlane.xlu1 %908 }
 0x48c   : > { %1417 = vrcp.f32 %v909_v56 }
 0x48e   : > { %v912_v58 = vpop.xlane.xlu0 %911 }
 0x48f   : > { %1419 = vrcp.f32 %v912_v58 }
 0x493   : > { %v915_v17 = vpop.xlane.xlu1 %914 }
 0x494   : > { %1421 = vrcp.f32 %v915_v17 }
 0x496   : > { %v1418_v19 = vpop.eup %1417 }
 0x497   : > { %v918_v21 = vpop.xlane.xlu0 %917  ;;  %v972_v43 = vmul.f32 %v1418_v19, %v1993_v41  ;;  %v971_v46 = vmul.f32 %v1418_v19, %v1991_v28 }
 0x498   : > { %1423 = vrcp.f32 %v918_v21 }
 0x499   : > { %v1420_v42 = vpop.eup %1419 }
 0x49a   : > { %v974_v44 = vmul.f32 %v1420_v42, %v2001_v51  ;;  %v973_v60 = vmul.f32 %v1420_v42, %v1995_v47 }
 0x49b   : > { %v921_v27 = vpop.xlane.xlu1 %920 }
 0x49c   : > { %v1004_v33 = vpack.c.bf16 %v974_v44, %v972_v43  ;;  %v1003_v1 = vpack.c.bf16 %v973_v60, %v971_v46  ;;  %1425 = vrcp.f32 %v921_v27 }
 0x49e   : > { %1023 = vmatprep.subr.bf16.mxu1 %v1004_v33  ;;  %v924_v4 = vpop.xlane.xlu0 %923  ;;  %v1422_v35 = vpop.eup %1421 }
 0x49f   : > { %1427 = vrcp.f32 %v924_v4  ;;  %1024 = vmatpush1.bf16.xpose.msra.mxu1 %v1003_v1  ;;  %v976_v48 = vmul.f32 %v1422_v35, %v2009_v11  ;;  %v975_v51 = vmul.f32 %v1422_v35, %v2007_v9 }
 0x4a2   : > { %v1424_v45 = vpop.eup %1423 }
 0x4a3   : > { %v927_v30 = vpop.xlane.xlu1 %926  ;;  %v978_v41 = vmul.f32 %v1424_v45, %v2019_v20  ;;  %v977_v28 = vmul.f32 %v1424_v45, %v2015_v15 }
 0x4a4   : > { %1429 = vrcp.f32 %v927_v30 }
 0x4a5   : > { %v1006_v47 = vpack.c.bf16 %v978_v41, %v976_v48  ;;  %v1005_v31 = vpack.c.bf16 %v977_v28, %v975_v51 }
 0x4a6   : > { %v930_v34 = vpop.xlane.xlu0 %929  ;;  %v1426_v50 = vpop.eup %1425 }
 0x4a7   : > { %1431 = vrcp.f32 %v930_v34  ;;  %1025 = vmatprep.subr.bf16.mxu1 %v1006_v47  ;;  %v980_v52 = vmul.f32 %v1426_v50, %v2025_v23  ;;  %v979_v9 = vmul.f32 %v1426_v50, %v2023_v22 }
 0x4a8   : > { %1026 = vmatpush1.bf16.xpose.msra.mxu1 %v1005_v31 }
 0x4a9   : > { %v1428_v6 = vpop.eup %1427 }
 0x4aa   : > { %v982_v8 = vmul.f32 %v1428_v6, %v2033_v29  ;;  %v981_v11 = vmul.f32 %v1428_v6, %v2027_v24 }
 0x4ab   : > { %v933_v20 = vpop.xlane.xlu1 %932 }
 0x4ac   : > { %v1008_v5 = vpack.c.bf16 %v982_v8, %v980_v52  ;;  %1433 = vrcp.f32 %v933_v20  ;;  %v1007_v38 = vpack.c.bf16 %v981_v11, %v979_v9  ;;  %v1021_v52 = vld [vmem:[#allocation3 + $0x10] sm:$0xff] }
 0x4ae   : > { %1027 = vmatprep.subr.bf16.mxu1 %v1008_v5  ;;  %v936_v15 = vpop.xlane.xlu0 %935  ;;  %v1430_v40 = vpop.eup %1429 }
 0x4af   : > { %1435 = vrcp.f32 %v936_v15  ;;  %v984_v56 = vmul.f32 %v1430_v40, %v2041_v32  ;;  %v983_v17 = vmul.f32 %v1430_v40, %v2039_v49 }
 0x4b0   : > { %1028 = vmatpush1.bf16.xpose.msra.mxu1 %v1007_v38 }
 0x4b1   : > { %v1432_v14 = vpop.eup %1431 }
 0x4b2   : > { %v986_v23 = vmul.f32 %v1432_v14, %v2049_v59  ;;  %v985_v29 = vmul.f32 %v1432_v14, %v2043_v53 }
 0x4b3   : > { %v939_v58 = vpop.xlane.xlu1 %938 }
 0x4b4   : > { %v1010_v24 = vpack.c.bf16 %v986_v23, %v984_v56  ;;  %1437 = vrcp.f32 %v939_v58  ;;  %v1009_v19 = vpack.c.bf16 %v985_v29, %v983_v17 }
 0x4b6   : > { %1029 = vmatprep.subr.bf16.mxu1 %v1010_v24  ;;  %v942_v22 = vpop.xlane.xlu0 %941  ;;  %v1434_v21 = vpop.eup %1433 }
 0x4b7   : > { %1439 = vrcp.f32 %v942_v22  ;;  %v988_v43 = vmul.f32 %v1434_v21, %v2057_v13  ;;  %v987_v46 = vmul.f32 %v1434_v21, %v2055_v55 }
 0x4b8   : > { %1030 = vmatpush1.bf16.xpose.msra.mxu1 %v1009_v19 }
 0x4b9   : > { %v1436_v42 = vpop.eup %1435 }
 0x4ba   : > { %v990_v32 = vmul.f32 %v1436_v42, %v2065_v18  ;;  %v989_v59 = vmul.f32 %v1436_v42, %v2059_v16 }
 0x4bb   : > { %v945_v44 = vpop.xlane.xlu1 %944 }
 0x4bc   : > { %1441 = vrcp.f32 %v945_v44  ;;  %v1012_v53 = vpack.c.bf16 %v990_v32, %v988_v43  ;;  %v1011_v60 = vpack.c.bf16 %v989_v59, %v987_v46 }
 0x4bd   : > { %v948_v49 = vpop.xlane.xlu0 %947 }
 0x4be   : > { %1031 = vmatprep.subr.bf16.mxu1 %v1012_v53  ;;  %1443 = vrcp.f32 %v948_v49  ;;  %v1438_v27 = vpop.eup %1437 }
 0x4bf   : > { %v992_v1 = vmul.f32 %v1438_v27, %v2073_v25  ;;  %v991_v35 = vmul.f32 %v1438_v27, %v2071_v61 }
 0x4c0   : > { %1032 = vmatpush1.bf16.xpose.msra.mxu1 %v1011_v60 }
 0x4c1   : > { %v1440_v33 = vpop.eup %1439 }
 0x4c2   : > { %v994_v13 = vmul.f32 %v1440_v33, %v2081_v39  ;;  %v993_v18 = vmul.f32 %v1440_v33, %v2075_v26 }
 0x4c3   : > { %v951_v4 = vpop.xlane.xlu1 %950 }
 0x4c4   : > { %1445 = vrcp.f32 %v951_v4  ;;  %v1014_v16 = vpack.c.bf16 %v994_v13, %v992_v1  ;;  %v1013_v30 = vpack.c.bf16 %v993_v18, %v991_v35 }
 0x4c5   : > { %v954_v45 = vpop.xlane.xlu0 %953 }
 0x4c6   : > { %v1442_v55 = vpop.eup %1441  ;;  %1033 = vmatprep.subr.bf16.mxu1 %v1014_v16  ;;  %1447 = vrcp.f32 %v954_v45 }
 0x4c7   : > { %v996_v41 = vmul.f32 %v1442_v55, %v2089_v57  ;;  %v995_v26 = vmul.f32 %v1442_v55, %v2087_v7  ;;  %v1022_v7 = vld [vmem:[#allocation3 + $0x18] sm:$0xff] }
 0x4c8   : > { %v1444_v48 = vpop.eup %1443  ;;  %1034 = vmatpush1.bf16.xpose.msra.mxu1 %v1013_v30 }
 0x4c9   : > { %v998_v25 = vmul.f32 %v1444_v48, %v2095_v10  ;;  %v997_v39 = vmul.f32 %v1444_v48, %v2091_v3  ;;  %v1019_v10 = vld [vmem:[#allocation3] sm:$0xff] }
 0x4cb   : > { %v1016_v51 = vpack.c.bf16 %v998_v25, %v996_v41  ;;  %v1015_v47 = vpack.c.bf16 %v997_v39, %v995_v26 }
 0x4cd   : > { %1035 = vmatprep.subr.bf16.mxu1 %v1016_v51 }
 0x4ce   : > { %v1446_v28 = vpop.eup %1445 }
 0x4cf   : > { %v1000_v31 = vmul.f32 %v1446_v28, %v2101_v37  ;;  %v999_v57 = vmul.f32 %v1446_v28, %v2099_v36  ;;  %v1073_v37 = vstv %s1072_s17  ;;  %s1483_s17 = sshll.u32 %s1610_s18, 4  ;;  %s1484_s17 = int_to_ptr.vmem [resolvable:$false] %s1483_s17 }
 0x4d0   : > { %v1448_v61 = vpop.eup %1447  ;;  %1036 = vmatpush1.bf16.xpose.msra.mxu1 %v1015_v47  ;;  %s1485_s23 = scalar_lea.vmem %s1484_s17, 1024  ;;  %p1486_p1 = scmp.lt.s32.totalorder %s2156_s24, %s1484_s17 }
 0x4d1   : > { %v1002_v34 = vmul.f32 %v1448_v61, %v2107_v54  ;;  %v1001_v50 = vmul.f32 %v1448_v61, %v2103_v12  ;;  %p1487_p6 = scmp.lt.s32.totalorder %s1485_s23, %s1479_s26 }
 0x4d3   : > { %v1018_v6 = vpack.c.bf16 %v1002_v34, %v1000_v31  ;;  %v1017_v3 = vpack.c.bf16 %v1001_v50, %v999_v57  ;;  %p1488_p9 = por %p1487_p6, %p1486_p1 }
 0x4d5   : > { %1037 = vmatprep.subr.bf16.mxu1 %v1018_v6  ;;  %p1489_p3 = pnand %p1488_p9, %p1482_p0 }
 0x4d8   : > { %1038 = vmatpush1.bf16.xpose.msra.mxu1 %v1017_v3 }
 0x4df   : > { %1056 = vmatmul.mubr.bf16.vlgmr.msra.gmra.mrb[0].mxu1 %v1019_v10 }
 0x4e0   : > { %1063 = vmatprep.mubr.bf16.mxu1 %v1022_v7 }
 0x4e7   : > { %1064 = vmatmul.mubr.bf16.gmra.mrb[4].mxu1 %v1021_v52 }
 0x5b2   : > { %v1057_v54 = vpop.f32.mrb[0].mxu1 }
 0x5b3   : > { %v1074_v12 = vmul.f32 %v1073_v37, %v1057_v54  ;;  %v1059_v8 = vpop.f32.mrb[1].mxu1 }
 0x5b4   : > { %v1060_v36 = vpop.f32.mrb[2].mxu1 }
 0x5b5   : > { %v1078_v11 = vadd.f32 %v1074_v12, %v1864_v62  ;;  %v1075_v20 = vmul.f32 %v1073_v37, %v1060_v36  ;;  %v1062_v5 = vpop.f32.mrb[3].mxu1 }
 0x5b7   : > { %1082 = vst [vmem:[%s1818_s15] sm:$0xff] %v1078_v11  ;;  %v1079_v9 = vadd.f32 %v1075_v20, %v1866_v63 }
 0x5b9   : > { %1083 = vst [vmem:[%s1818_s15 + $0x8] sm:$0xff] %v1079_v9 }
 0x5ba   : > { %v1065_v15 = vpop.f32.mrb[4].mxu1 }
 0x5bb   : > { %v1076_v38 = vmul.f32 %v1073_v37, %v1065_v15  ;;  %v1067_v40 = vpop.f32.mrb[5].mxu1 }
 0x5bc   : > { %v1068_v14 = vpop.f32.mrb[6].mxu1 }
 0x5bd   : > { %v1080_v56 = vadd.f32 %v1076_v38, %v1868_v0  ;;  %v1077_v62 = vmul.f32 %v1073_v37, %v1068_v14  ;;  %v1070_v23 = vpop.f32.mrb[7].mxu1 }
 0x5bf   : > { %1084 = vst [vmem:[%s1818_s15 + $0x10] sm:$0xff] %v1080_v56  ;;  %v1081_v63 = vadd.f32 %v1077_v62, %v1872_v2 }
 0x5c1   : > { %1085 = vst [vmem:[%s1818_s15 + $0x18] sm:$0xff] %v1081_v63 }
 0x5c2   : > { %1492 = shalt.err (!%p1489_p3)
}
 0x5c3   : > { %s1493_s15 = scalar_lea.hbm %s2154_s22, 512  ;;  %s1497_s14 = scalar_lea.hbm %s2251_s20, 2048 }
 0x5c4   : > { %p1494_p11 = scmp.ne.s32.totalorder %s2154_s22, %s1493_s15  ;;  %p1498_p8 = scmp.lt.u32.totalorder %s2154_s22, %s2251_s20 }
 0x5c5   : > { %p1499_p10 = scmp.lt.u32.totalorder %s1497_s14, %s1493_s15  ;;  %p1501_p7 = scmp.lt.u32.totalorder %s1493_s15, %s2154_s22 }
 0x5c6   : > { %p1495_p13 = pnand %p1494_p11, %p2253_p2 }
 0x5c7   : > { %p1500_p12 = por %p1499_p10, %p1498_p8 }
 0x5c8   : > { %p1496_p5 = pneg %p1495_p13 }
 0x5c9   : > { %p1502_p4 = por %p1501_p7, %p1500_p12 }
 0x5cb   : > { %p1503_p0 = pnand %p1502_p4, %p1496_p5 }
 0x5cd   : > { %1506 = shalt.err (!%p1503_p0)
}
 0x5ce   : > { %s1611_s26 = smov 128   ;;  %s1612_s18 = smov 256  }
 0x5cf   : > { %s1613_s17 = smov 8  }
 0x5d0   : > { %1237 = dma.vmem_to_hbm [thread:$0]  (%p2253_p2), %s2156_s24, 512, %s2154_s22, %s2163_s21, %s1611_s26, %s1612_s18, %s1613_s17  }
 0x5d1 PF: > { %p1248_p1 = scmp.ge.s32.totalorder %s1601_s16, 2  ;;  %s1116_s23 = sand.u32 1, %s1561_s29  }
 0x5d2   : > { %p2254_p6 = scmp.ne.s32.totalorder %s2248_s7, 0  ;;  %s1117_s15 = scalar_lea.sflag [#allocation7], %s1116_s23 }
 0x5d4   : > { %p1244_p9 = pnand %p1248_p1, %p2254_p6 }
 0x5d6   : > { %1556 = dma.done.wait (!%p1244_p9), %s1117_s15, 512  }
 0x5d7   : > { %1558 = vsyncadd (!%p1244_p9), %s1117_s15, 4294966784  ;;  %s25_s16 = sadd.s32 1, %s1601_s16   ;;  %s2255_s28 = smov %s1749_s10 }
 0x5d8   : > { %p22_p3 = scmp.ge.s32.totalorder %s25_s16, 6   ;;  %s2256_s13 = sld [smem:[#allocation11_spill]] }
 0x5d9   : > { %s2257_s14 = sld [smem:[#allocation12_spill]]  ;;  %s2258_s7 = sld [smem:[#allocation13_spill]] }
 0x5da   : > { %s2259_s15 = sld [smem:[#allocation14_spill]]  ;;  %s2260_s29 = smov %s1565_s30 }
 0x5db   : > { %s2261_s30 = smov %s1569_s9  ;;  %s2262_s9 = smov %s1752_s19 }
 0x5dc   : > { %s2263_s10 = smov %s1577_s11  ;;  %s2264_s11 = smov %s1581_s12 }
 0x5dd   : > { %s2265_s12 = smov %s2255_s28  ;;  %24 = sbr.rel (!%p22_p3) target bundleno = 12 (0xc), region = 102 }
 0x5e4   :  { %1122 = vsyncpa [#allocation6], 1 }
 0x5e5   :  { %1124 = vsyncpa [#allocation6 + $0x1], 1 }
 0x5e6   :  { %1125 = vsyncpa [#allocation7], 1 }
 0x5e7   :  { %1127 = vsyncpa [#allocation7 + $0x1], 1 }

</bundles_post_ra>
